<compile_context>
chip_gen: v7x
topology: tpu7x:2x2x1
jax: 0.10.0
libtpu: 0.0.40
codegen_flags: <defaults>
</compile_context>

<pallas_src>
import functools
import math

import jax
import jax.numpy as jnp
from jax.experimental import pallas as pl
from jax.experimental.pallas import tpu as pltpu


# ----------------------------------------------------------------------------
# Tile-size helpers (keep tiles aligned to (8, 128) and dividing the array,
# or fall back to the full dimension which is always legal).
# ----------------------------------------------------------------------------
def _pick_tile(dim, target, align):
    if dim <= target:
        return dim
    t = (target // align) * align
    while t >= align:
        if dim % t == 0:
            return t
        t -= align
    return dim  # no aligned divisor <= target: use full extent


# ----------------------------------------------------------------------------
# Pallas kernels
# ----------------------------------------------------------------------------
def _matmul_kernel(x_ref, w_ref, b_ref, o_ref, acc_ref, *, activation):
    """o = act(x @ w + b); grid (M/tm, N/tn, K/tk); w pre-transposed (K, N) bf16."""
    @pl.when(pl.program_id(2) == 0)
    def _():
        acc_ref[...] = jnp.zeros_like(acc_ref)

    acc_ref[...] += jnp.dot(
        x_ref[...].astype(jnp.bfloat16), w_ref[...],
        preferred_element_type=jnp.float32)

    @pl.when(pl.program_id(2) == pl.num_programs(2) - 1)
    def _():
        y = acc_ref[...] + b_ref[...]
        if activation == "relu":
            y = jnp.maximum(y, 0.0)
        o_ref[...] = y.astype(o_ref.dtype)


def _embed_kernel(x_ref, w_ref, b_ref, pe_ref, o_ref, *, alpha):
    """o = (x @ w + b) * alpha + pe[batch]; grid (B,), PE read as a (1,1,D) block."""
    y = jnp.dot(x_ref[...].astype(jnp.bfloat16), w_ref[...],
                preferred_element_type=jnp.float32)
    pe_row = pe_ref[...].reshape(1, -1)            # (1, 1, D) -> (1, D), broadcast over S
    o_ref[...] = ((y + b_ref[...]) * alpha + pe_row).astype(o_ref.dtype)


def _matmul_res_ln_kernel(x_ref, w_ref, b_ref, r_ref, g_ref, bt_ref, o_ref,
                          acc_ref, *, eps):
    """o = LayerNorm((x @ w + b) + residual) * gamma + beta; grid (M/tm, K/tk)."""
    @pl.when(pl.program_id(1) == 0)
    def _():
        acc_ref[...] = jnp.zeros_like(acc_ref)

    acc_ref[...] += jnp.dot(
        x_ref[...].astype(jnp.bfloat16), w_ref[...],
        preferred_element_type=jnp.float32)

    @pl.when(pl.program_id(1) == pl.num_programs(1) - 1)
    def _():
        y = acc_ref[...] + b_ref[...] + r_ref[...].astype(jnp.float32)
        mu = jnp.mean(y, axis=-1, keepdims=True)
        d = y - mu
        var = jnp.mean(d * d, axis=-1, keepdims=True)
        o_ref[...] = (d * jax.lax.rsqrt(var + eps) * g_ref[...] + bt_ref[...]
                      ).astype(o_ref.dtype)


def _sdpa_head(qh, kh, vh):
    """Single-head SDPA. q is pre-scaled (1/sqrt(dk) folded into the q weights);
    softmax normalization is deferred to the (Sq, dk) output (O(Sq*dk) muls)."""
    s = jax.lax.dot_general(qh, kh, (((1,), (1,)), ((), ())),
                            preferred_element_type=jnp.float32)       # (Sq, Sk)
    s = s - jnp.max(s, axis=-1, keepdims=True)
    p = jnp.exp(s)
    denom = jnp.sum(p, axis=-1, keepdims=True)
    oh = jnp.dot(p.astype(jnp.bfloat16), vh, preferred_element_type=jnp.float32)
    return oh * pl.reciprocal(denom, approx=True)                     # EUP slot


def _mha_self_kernel(qkv_ref, o_ref, *, nhead):
    """Self-attention for one batch: reads the fused (S, 3D) qkv block, does the
    head split / merge in VMEM, writes the merged (S, D) block."""
    qkv = qkv_ref[...]                              # (S, 3D) bf16
    D = qkv.shape[-1] // 3
    dk = D // nhead
    heads = []
    for h in range(nhead):                          # nhead is static -> unrolled
        qh = qkv[:, h * dk:(h + 1) * dk]
        kh = qkv[:, D + h * dk:D + (h + 1) * dk]
        vh = qkv[:, 2 * D + h * dk:2 * D + (h + 1) * dk]
        heads.append(_sdpa_head(qh, kh, vh))
    o_ref[...] = jnp.concatenate(heads, axis=-1).astype(o_ref.dtype)


def _mha_cross_kernel(q_ref, kv_ref, o_ref, *, nhead):
    """Cross-attention for one batch: q block (Sq, D), fused kv block (Sk, 2D)."""
    q = q_ref[...]                                   # (Sq, D) bf16, q pre-scaled
    kv = kv_ref[...]                                 # (Sk, 2D) bf16
    D = q.shape[-1]
    dk = D // nhead
    heads = []
    for h in range(nhead):
        qh = q[:, h * dk:(h + 1) * dk]
        kh = kv[:, h * dk:(h + 1) * dk]
        vh = kv[:, D + h * dk:D + (h + 1) * dk]
        heads.append(_sdpa_head(qh, kh, vh))
    o_ref[...] = jnp.concatenate(heads, axis=-1).astype(o_ref.dtype)


# ----------------------------------------------------------------------------
# Pallas wrappers
# ----------------------------------------------------------------------------
def pallas_linear(x2d, wT, b, activation=None, out_dtype=jnp.bfloat16):
    """y = act(x @ wT + b); wT is pre-packed (K, N) bf16, b is (1, N) f32."""
    M, K = x2d.shape
    N = wT.shape[1]
    tm = _pick_tile(M, 512, 8)
    tn = _pick_tile(N, 256, 128)
    tk = _pick_tile(K, 1024, 128)
    if (M // tm) * (N // tn) == 1 and M >= 16:
        tm = _pick_tile(M, max(8, M // 2), 8)    # >=2 parallel steps (v7x dual TC)
    return pl.pallas_call(
        functools.partial(_matmul_kernel, activation=activation),
        out_shape=jax.ShapeDtypeStruct((M, N), out_dtype),
        grid_spec=pltpu.PrefetchScalarGridSpec(
            num_scalar_prefetch=0,
            grid=(M // tm, N // tn, K // tk),
            in_specs=[
                pl.BlockSpec((tm, tk), lambda i, j, k: (i, k)),
                pl.BlockSpec((tk, tn), lambda i, j, k: (k, j)),
                pl.BlockSpec((1, tn), lambda i, j, k: (0, j)),
            ],
            out_specs=pl.BlockSpec((tm, tn), lambda i, j, k: (i, j)),
            scratch_shapes=[pltpu.VMEM((tm, tn), jnp.float32)],
        ),
        compiler_params=pltpu.CompilerParams(
            dimension_semantics=("parallel", "parallel", "arbitrary")),
    )(x2d, wT, b)


def pallas_embed(x2d, wT, b, pe_b3, alpha):
    """y = (x @ wT + b) * alpha + pe[batch]; grid over batch, PE block per batch."""
    M, K = x2d.shape
    N = wT.shape[1]
    B = pe_b3.shape[0]
    S = M // B
    return pl.pallas_call(
        functools.partial(_embed_kernel, alpha=alpha),
        out_shape=jax.ShapeDtypeStruct((M, N), jnp.bfloat16),
        grid_spec=pltpu.PrefetchScalarGridSpec(
            num_scalar_prefetch=0,
            grid=(B,),
            in_specs=[
                pl.BlockSpec((S, K), lambda bi: (bi, 0)),
                pl.BlockSpec((K, N), lambda bi: (0, 0)),
                pl.BlockSpec((1, N), lambda bi: (0, 0)),
                pl.BlockSpec((1, 1, N), lambda bi: (bi, 0, 0)),
            ],
            out_specs=pl.BlockSpec((S, N), lambda bi: (bi, 0)),
        ),
        compiler_params=pltpu.CompilerParams(dimension_semantics=("parallel",)),
    )(x2d, wT, b, pe_b3)


def pallas_linear_res_ln(x2d, wT, b, res2d, gamma, beta, eps=1e-5):
    """y = LayerNorm(x @ wT + b + res) * gamma + beta; full output width per tile."""
    M, K = x2d.shape
    N = wT.shape[1]                       # == d_model: LN reduces over full width
    tm = _pick_tile(M, 512, 8)
    tk = _pick_tile(K, 1024, 128)
    if M // tm == 1 and M >= 16:
        tm = _pick_tile(M, max(8, M // 2), 8)
    return pl.pallas_call(
        functools.partial(_matmul_res_ln_kernel, eps=eps),
        out_shape=jax.ShapeDtypeStruct((M, N), jnp.bfloat16),
        grid_spec=pltpu.PrefetchScalarGridSpec(
            num_scalar_prefetch=0,
            grid=(M // tm, K // tk),
            in_specs=[
                pl.BlockSpec((tm, tk), lambda i, k: (i, k)),
                pl.BlockSpec((tk, N), lambda i, k: (k, 0)),
                pl.BlockSpec((1, N), lambda i, k: (0, 0)),
                pl.BlockSpec((tm, N), lambda i, k: (i, 0)),
                pl.BlockSpec((1, N), lambda i, k: (0, 0)),
                pl.BlockSpec((1, N), lambda i, k: (0, 0)),
            ],
            out_specs=pl.BlockSpec((tm, N), lambda i, k: (i, 0)),
            scratch_shapes=[pltpu.VMEM((tm, N), jnp.float32)],
        ),
        compiler_params=pltpu.CompilerParams(
            dimension_semantics=("parallel", "arbitrary")),
    )(x2d, wT, b, res2d, gamma, beta)


def pallas_mha_self(qkv, B, nhead):
    """qkv: (B*S, 3D) bf16 fused projection -> (B*S, D) bf16; grid over batch."""
    M, threeD = qkv.shape
    D = threeD // 3
    S = M // B
    # TODO(synk): split Sq (and tile Sk with online softmax) as extra parallel
    #             axes for B==1 or very long sequences (v7x dual-TC / VMEM).
    return pl.pallas_call(
        functools.partial(_mha_self_kernel, nhead=nhead),
        out_shape=jax.ShapeDtypeStruct((M, D), jnp.bfloat16),
        grid_spec=pltpu.PrefetchScalarGridSpec(
            num_scalar_prefetch=0,
            grid=(B,),
            in_specs=[pl.BlockSpec((S, threeD), lambda bi: (bi, 0))],
            out_specs=pl.BlockSpec((S, D), lambda bi: (bi, 0)),
        ),
        compiler_params=pltpu.CompilerParams(dimension_semantics=("parallel",)),
    )(qkv)


def pallas_mha_cross(q2, kv, B, nhead):
    """q2: (B*Sq, D), kv: (B*Sk, 2D) fused k|v -> (B*Sq, D); grid over batch."""
    Mq, D = q2.shape
    Mk, twoD = kv.shape
    Sq, Sk = Mq // B, Mk // B
    return pl.pallas_call(
        functools.partial(_mha_cross_kernel, nhead=nhead),
        out_shape=jax.ShapeDtypeStruct((Mq, D), jnp.bfloat16),
        grid_spec=pltpu.PrefetchScalarGridSpec(
            num_scalar_prefetch=0,
            grid=(B,),
            in_specs=[pl.BlockSpec((Sq, D), lambda bi: (bi, 0)),
                      pl.BlockSpec((Sk, twoD), lambda bi: (bi, 0))],
            out_specs=pl.BlockSpec((Sq, D), lambda bi: (bi, 0)),
        ),
        compiler_params=pltpu.CompilerParams(dimension_semantics=("parallel",)),
    )(q2, kv)


# ----------------------------------------------------------------------------
# Transformer blocks built from the kernels
# ----------------------------------------------------------------------------
def attention_block(x_q, x_kv, ap, ln_g, ln_b, nhead, *, self_attn):
    """MultiheadAttention + residual + LayerNorm (post-norm, dropout=identity)."""
    B, Sq, D = x_q.shape
    Sk = x_kv.shape[1]
    xq2 = x_q.reshape(B * Sq, D)

    if self_attn:
        qkv = pallas_linear(xq2, ap["in_wT"], ap["in_b"])        # (B*Sq, 3D) fused
        o2 = pallas_mha_self(qkv, B, nhead)                      # (B*Sq, D)
    else:
        xkv2 = x_kv.reshape(B * Sk, D)
        q2 = pallas_linear(xq2, ap["q_wT"], ap["q_b"])           # (B*Sq, D), pre-scaled
        kv = pallas_linear(xkv2, ap["kv_wT"], ap["kv_b"])        # (B*Sk, 2D) fused
        o2 = pallas_mha_cross(q2, kv, B, nhead)                  # (B*Sq, D)

    # output projection with fused residual-add + LayerNorm epilogue
    y2 = pallas_linear_res_ln(o2, ap["out_wT"], ap["out_b"], xq2, ln_g, ln_b)
    return y2.reshape(B, Sq, D)


def ffn_block(x, lp, ln_g, ln_b):
    """ReLU-FFN + residual + LayerNorm; lin2 fuses the residual+LN epilogue."""
    B, S, D = x.shape
    x2 = x.reshape(B * S, D)
    h = pallas_linear(x2, lp["lin1_wT"], lp["lin1_b"], activation="relu")
    y2 = pallas_linear_res_ln(h, lp["lin2_wT"], lp["lin2_b"], x2, ln_g, ln_b)
    return y2.reshape(B, S, D)


def make_pe_table(d_model, max_len=6000):
    position = jnp.arange(max_len, dtype=jnp.float32)[:, None]
    div_term = jnp.exp(
        jnp.arange(0, d_model, 2, dtype=jnp.float32) * (-math.log(10000.0) / d_model))
    pe = jnp.zeros((max_len, d_model), jnp.float32)
    pe = pe.at[:, 0::2].set(jnp.sin(position * div_term))
    pe = pe.at[:, 1::2].set(jnp.cos(position * div_term))
    return pe


def forward(src, kp, pe, *, d_model, nhead):
    """src: (B, S, input_dim) -> (B, S, input_dim); matches the PyTorch forward."""
    B, S, input_dim = src.shape
    tgt = jnp.concatenate(
        [jnp.zeros((B, 1, input_dim), src.dtype), src[:, :-1, :]], axis=1)

    # NOTE: reproduces the original module exactly: with batch_first inputs,
    # pe[:x.size(0)] indexes by *batch* position and broadcasts over sequence.
    pe_b3 = pe[:B].reshape(B, 1, d_model)
    alpha = math.sqrt(d_model)

    def embed(x):
        e = pallas_embed(x.reshape(B * S, input_dim),
                         kp["emb_wT"], kp["emb_b"], pe_b3, alpha)
        return e.reshape(B, S, d_model)              # dropout = identity (eval)

    mem = embed(src)
    for lp in kp["enc_layers"]:
        mem = attention_block(mem, mem, lp["self_attn"],
                              lp["norm1_g"], lp["norm1_b"], nhead, self_attn=True)
        mem = ffn_block(mem, lp, lp["norm2_g"], lp["norm2_b"])

    out = embed(tgt)
    for lp in kp["dec_layers"]:
        # NOTE: the original module passes no tgt_mask, so no causal mask here.
        out = attention_block(out, out, lp["self_attn"],
                              lp["norm1_g"], lp["norm1_b"], nhead, self_attn=True)
        out = attention_block(out, mem, lp["cross_attn"],
                              lp["norm2_g"], lp["norm2_b"], nhead, self_attn=False)
        out = ffn_block(out, lp, lp["norm3_g"], lp["norm3_b"])

    # final projection: padded to 128 output lanes at pack time (lane-dense vst),
    # computed in f32 and sliced back to input_dim here.
    y = pallas_linear(out.reshape(B * S, d_model), kp["out_wT"], kp["out_b"],
                      out_dtype=jnp.float32)
    return y[:, :input_dim].reshape(B, S, input_dim)


# ----------------------------------------------------------------------------
# Parameter init (torch layout, f32) and one-time packing for the kernels
# ----------------------------------------------------------------------------
def init_params(key, input_dim, d_model, nhead, n_enc, n_dec, dff):
    keys = iter(jax.random.split(key, 256))

    def w(shape):
        return jax.random.normal(next(keys), shape, jnp.float32) * 0.05

    def attn_p():
        return dict(in_w=w((3 * d_model, d_model)), in_b=w((3 * d_model,)),
                    out_w=w((d_model, d_model)), out_b=w((d_model,)))

    def ln_p():
        return jnp.ones((d_model,), jnp.float32), jnp.zeros((d_model,), jnp.float32)

    params = dict(
        emb_w=w((d_model, input_dim)), emb_b=w((d_model,)),
        out_w=w((input_dim, d_model)), out_b=w((input_dim,)),
        enc_layers=[], dec_layers=[])
    for _ in range(n_enc):
        g1, b1 = ln_p(); g2, b2 = ln_p()
        params["enc_layers"].append(dict(
            self_attn=attn_p(),
            lin1_w=w((dff, d_model)), lin1_b=w((dff,)),
            lin2_w=w((d_model, dff)), lin2_b=w((d_model,)),
            norm1_g=g1, norm1_b=b1, norm2_g=g2, norm2_b=b2))
    for _ in range(n_dec):
        g1, b1 = ln_p(); g2, b2 = ln_p(); g3, b3 = ln_p()
        params["dec_layers"].append(dict(
            self_attn=attn_p(), cross_attn=attn_p(),
            lin1_w=w((dff, d_model)), lin1_b=w((dff,)),
            lin2_w=w((d_model, dff)), lin2_b=w((d_model,)),
            norm1_g=g1, norm1_b=b1, norm2_g=g2, norm2_b=b2,
            norm3_g=g3, norm3_b=b3))
    return params


def pack_params(params, d_model, nhead):
    """Pre-transpose weights to (K, N) bf16 once; biases / LN params as (1, N) f32.
    Folds the 1/sqrt(dk) attention scale into the q-projection weights and
    zero-pads the final projection to a multiple of 128 output features."""
    dk = d_model // nhead
    q_scale = 1.0 / math.sqrt(dk)

    def wT(w):
        return jnp.asarray(w, jnp.float32).T.astype(jnp.bfloat16)

    def row(b):
        return jnp.asarray(b, jnp.float32).reshape(1, -1)

    def pack_attn(a):
        in_w = jnp.asarray(a["in_w"], jnp.float32)            # (3D, D), rows = q|k|v
        in_b = jnp.asarray(a["in_b"], jnp.float32)            # (3D,)
        scale = jnp.concatenate([jnp.full((d_model,), q_scale, jnp.float32),
                                 jnp.ones((2 * d_model,), jnp.float32)])
        in_wT = (in_w * scale[:, None]).T.astype(jnp.bfloat16)  # (D, 3D), q pre-scaled
        in_b_row = (in_b * scale).reshape(1, -1)                 # (1, 3D)
        return dict(
            in_wT=in_wT, in_b=in_b_row,
            q_wT=in_wT[:, :d_model], q_b=in_b_row[:, :d_model],
            kv_wT=in_wT[:, d_model:], kv_b=in_b_row[:, d_model:],
            out_wT=wT(a["out_w"]), out_b=row(a["out_b"]))

    def pack_enc(p):
        return dict(
            self_attn=pack_attn(p["self_attn"]),
            lin1_wT=wT(p["lin1_w"]), lin1_b=row(p["lin1_b"]),
            lin2_wT=wT(p["lin2_w"]), lin2_b=row(p["lin2_b"]),
            norm1_g=row(p["norm1_g"]), norm1_b=row(p["norm1_b"]),
            norm2_g=row(p["norm2_g"]), norm2_b=row(p["norm2_b"]))

    def pack_dec(p):
        d = pack_enc(p)
        d["cross_attn"] = pack_attn(p["cross_attn"])
        d["norm3_g"], d["norm3_b"] = row(p["norm3_g"]), row(p["norm3_b"])
        return d

    out_w = jnp.asarray(params["out_w"], jnp.float32)         # (input_dim, D)
    out_b = jnp.asarray(params["out_b"], jnp.float32)
    input_dim = out_w.shape[0]
    n_pad = (-input_dim) % 128
    out_wT_p = jnp.pad(out_w.T, ((0, 0), (0, n_pad))).astype(jnp.bfloat16)
    out_b_p = jnp.pad(out_b, (0, n_pad)).reshape(1, -1)

    return dict(
        emb_wT=wT(params["emb_w"]), emb_b=row(params["emb_b"]),
        out_wT=out_wT_p, out_b=out_b_p,
        enc_layers=[pack_enc(p) for p in params["enc_layers"]],
        dec_layers=[pack_dec(p) for p in params["dec_layers"]])


# ----------------------------------------------------------------------------
# Pure-JAX reference (f32) for sanity checking
# ----------------------------------------------------------------------------
def ref_forward(src, params, pe, *, d_model, nhead):
    def lin(x, w, b):
        return x @ w.T + b

    def ln(x, g, b, eps=1e-5):
        mu = x.mean(-1, keepdims=True)
        var = ((x - mu) ** 2).mean(-1, keepdims=True)
        return (x - mu) / jnp.sqrt(var + eps) * g + b

    def mha(xq, xkv, p):
        B, Sq, D = xq.shape
        Sk = xkv.shape[1]
        dk = D // nhead
        q = lin(xq, p["in_w"][:D], p["in_b"][:D])
        k = lin(xkv, p["in_w"][D:2 * D], p["in_b"][D:2 * D])
        v = lin(xkv, p["in_w"][2 * D:], p["in_b"][2 * D:])
        q = q.reshape(B, Sq, nhead, dk).transpose(0, 2, 1, 3)
        k = k.reshape(B, Sk, nhead, dk).transpose(0, 2, 1, 3)
        v = v.reshape(B, Sk, nhead, dk).transpose(0, 2, 1, 3)
        s = jnp.einsum("bhqd,bhkd->bhqk", q, k) / math.sqrt(dk)
        a = jax.nn.softmax(s, axis=-1)
        o = jnp.einsum("bhqk,bhkd->bhqd", a, v).transpose(0, 2, 1, 3).reshape(B, Sq, D)
        return lin(o, p["out_w"], p["out_b"])

    def ffn(x, p):
        return lin(jnp.maximum(lin(x, p["lin1_w"], p["lin1_b"]), 0.0),
                   p["lin2_w"], p["lin2_b"])

    B, S, input_dim = src.shape
    tgt = jnp.concatenate(
        [jnp.zeros((B, 1, input_dim), src.dtype), src[:, :-1, :]], axis=1)

    def embed(x):
        e = lin(x, params["emb_w"], params["emb_b"]) * math.sqrt(d_model)
        return e + pe[:B][:, None, :]

    mem = embed(src)
    for p in params["enc_layers"]:
        mem = ln(mem + mha(mem, mem, p["self_attn"]), p["norm1_g"], p["norm1_b"])
        mem = ln(mem + ffn(mem, p), p["norm2_g"], p["norm2_b"])
    out = embed(tgt)
    for p in params["dec_layers"]:
        out = ln(out + mha(out, out, p["self_attn"]), p["norm1_g"], p["norm1_b"])
        out = ln(out + mha(out, mem, p["cross_attn"]), p["norm2_g"], p["norm2_b"])
        out = ln(out + ffn(out, p), p["norm3_g"], p["norm3_b"])
    return lin(out, params["out_w"], params["out_b"])


# ----------------------------------------------------------------------------
if __name__ == "__main__":
    B, S, input_dim = 2, 8, 8
    d_model, nhead, dff = 32, 4, 64
    n_enc, n_dec = 2, 2

    key = jax.random.PRNGKey(0)
    kparam, kx = jax.random.split(key)
    params = init_params(kparam, input_dim, d_model, nhead, n_enc, n_dec, dff)
    kernel_params = pack_params(params, d_model, nhead)
    src = jax.random.normal(kx, (B, S, input_dim), jnp.float32)
    pe = make_pe_table(d_model)

    fwd = jax.jit(functools.partial(forward, d_model=d_model, nhead=nhead))
    out = jax.block_until_ready(fwd(src, kernel_params, pe))

    assert out.shape == (B, S, input_dim)
    assert bool(jnp.all(jnp.isfinite(out)))

    ref = ref_forward(src, params, pe, d_model=d_model, nhead=nhead)
    err = float(jnp.max(jnp.abs(out - ref)))
    # bf16 activations + bf16 MXU inputs with f32 accumulation: loose tolerance.
    assert err < 1.5e-1, err

    print("KERNEL_OK")
</pallas_src>

<mosaic_0001>
module attributes {stable_mosaic.version = 11 : i64} {
  func.func @_embed_kernel(%arg0: i32, %arg1: memref<8x8xf32, #tpu.memory_space<vmem>>, %arg2: memref<8x32xbf16, #tpu.memory_space<vmem>>, %arg3: memref<1x32xf32, #tpu.memory_space<vmem>>, %arg4: memref<1x1x32xf32, #tpu.memory_space<vmem>>, %arg5: memref<8x32xbf16, #tpu.memory_space<vmem>>) attributes {dimension_semantics = [#tpu.dimension_semantics<parallel>], iteration_bounds = array<i64: 2>, scalar_prefetch = 0 : i64, scratch_operands = 0 : i64, tpu.core_type = #tpu.core_type<tc>, window_params = [{transform_indices = @transform_0, window_bounds = array<i64: 8, 8>}, {pipeline_mode = #tpu.pipeline_mode<synchronous>, transform_indices = @transform_1, window_bounds = array<i64: 8, 32>}, {pipeline_mode = #tpu.pipeline_mode<synchronous>, transform_indices = @transform_2, window_bounds = array<i64: 1, 32>}, {transform_indices = @transform_3, window_bounds = array<i64: 1, 1, 32>}, {transform_indices = @transform_4, window_bounds = array<i64: 8, 32>}]} {
    %c0 = arith.constant 0 : index
    %c0_0 = arith.constant 0 : index
    %0 = vector.load %arg1[%c0, %c0_0] : memref<8x8xf32, #tpu.memory_space<vmem>>, vector<8x8xf32>
    %1 = arith.truncf %0 : vector<8x8xf32> to vector<8x8xbf16>
    %c0_1 = arith.constant 0 : index
    %c0_2 = arith.constant 0 : index
    %2 = vector.load %arg2[%c0_1, %c0_2] : memref<8x32xbf16, #tpu.memory_space<vmem>>, vector<8x32xbf16>
    %cst = arith.constant dense<0.000000e+00> : vector<8x32xf32>
    %3 = tpu.matmul %1, %2, %cst {dimension_numbers = #tpu.dot_dimension_numbers<[1], [0], [0], [1], [0, 0, 1, 1], [], []>} : vector<8x8xbf16>, vector<8x32xbf16>, vector<8x32xf32> -> vector<8x32xf32>
    %c0_3 = arith.constant 0 : index
    %c0_4 = arith.constant 0 : index
    %c0_5 = arith.constant 0 : index
    %4 = vector.load %arg4[%c0_3, %c0_4, %c0_5] : memref<1x1x32xf32, #tpu.memory_space<vmem>>, vector<1x1x32xf32>
    %5 = vector.shape_cast %4 : vector<1x1x32xf32> to vector<1x32xf32>
    %c0_6 = arith.constant 0 : index
    %c0_7 = arith.constant 0 : index
    %6 = vector.load %arg3[%c0_6, %c0_7] : memref<1x32xf32, #tpu.memory_space<vmem>>, vector<1x32xf32>
    %7 = vector.broadcast %6 : vector<1x32xf32> to vector<8x32xf32>
    %8 = arith.addf %3, %7 : vector<8x32xf32>
    %cst_8 = arith.constant 5.65685415 : f32
    %9 = vector.broadcast %cst_8 : f32 to vector<8x32xf32>
    %10 = arith.mulf %8, %9 : vector<8x32xf32>
    %11 = vector.broadcast %5 : vector<1x32xf32> to vector<8x32xf32>
    %12 = arith.addf %10, %11 : vector<8x32xf32>
    %13 = arith.truncf %12 : vector<8x32xf32> to vector<8x32xbf16>
    %c0_9 = arith.constant 0 : index
    %c0_10 = arith.constant 0 : index
    %14 = vector.load %arg5[%c0_9, %c0_10] : memref<8x32xbf16, #tpu.memory_space<vmem>>, vector<8x32xbf16>
    tpu.vector_store %arg5[%c0_9, %c0_10], %13 {strides = array<i32>} : memref<8x32xbf16, #tpu.memory_space<vmem>>, vector<8x32xbf16>,
    return
  }
  func.func @transform_0(%arg0: i32) -> (i32, i32) {
    %c0_i32 = arith.constant 0 : i32
    %c0_i32_0 = arith.constant 0 : i32
    return %arg0, %c0_i32 : i32, i32
  }
  func.func @transform_1(%arg0: i32) -> (i32, i32) {
    %c0_i32 = arith.constant 0 : i32
    %c0_i32_0 = arith.constant 0 : i32
    %c0_i32_1 = arith.constant 0 : i32
    return %c0_i32, %c0_i32_0 : i32, i32
  }
  func.func @transform_2(%arg0: i32) -> (i32, i32) {
    %c0_i32 = arith.constant 0 : i32
    %c0_i32_0 = arith.constant 0 : i32
    %c0_i32_1 = arith.constant 0 : i32
    return %c0_i32, %c0_i32_0 : i32, i32
  }
  func.func @transform_3(%arg0: i32) -> (i32, i32, i32) {
    %c0_i32 = arith.constant 0 : i32
    %c0_i32_0 = arith.constant 0 : i32
    %c0_i32_1 = arith.constant 0 : i32
    return %arg0, %c0_i32, %c0_i32_0 : i32, i32, i32
  }
  func.func @transform_4(%arg0: i32) -> (i32, i32) {
    %c0_i32 = arith.constant 0 : i32
    %c0_i32_0 = arith.constant 0 : i32
    return %arg0, %c0_i32 : i32, i32
  }
}

module attributes {stable_mosaic.version = 11 : i64} {
  func.func @_matmul_kernel(%arg0: i32, %arg1: i32, %arg2: i32, %arg3: memref<8x32xbf16, #tpu.memory_space<vmem>>, %arg4: memref<32x96xbf16, #tpu.memory_space<vmem>>, %arg5: memref<1x96xf32, #tpu.memory_space<vmem>>, %arg6: memref<8x96xbf16, #tpu.memory_space<vmem>>, %arg7: memref<8x96xf32, #tpu.memory_space<vmem>>) attributes {dimension_semantics = [#tpu.dimension_semantics<parallel>, #tpu.dimension_semantics<parallel>, #tpu.dimension_semantics<arbitrary>], iteration_bounds = array<i64: 2, 1, 1>, scalar_prefetch = 0 : i64, scratch_operands = 1 : i64, tpu.core_type = #tpu.core_type<tc>, window_params = [{transform_indices = @transform_0, window_bounds = array<i64: 8, 32>}, {transform_indices = @transform_1, window_bounds = array<i64: 32, 96>}, {transform_indices = @transform_2, window_bounds = array<i64: 1, 96>}, {transform_indices = @transform_3, window_bounds = array<i64: 8, 96>}]} {
    %c0_i32 = arith.constant 0 : i32
    %0 = arith.cmpi eq, %arg2, %c0_i32 : i32
    %1 = arith.extui %0 : i1 to i32
    %c0_i32_0 = arith.constant 0 : i32
    %2 = arith.cmpi ne, %1, %c0_i32_0 : i32
    scf.if %2 {
      %cst_10 = arith.constant 0.000000e+00 : f32
      %12 = vector.broadcast %cst_10 : f32 to vector<8x96xf32>
      %c0_11 = arith.constant 0 : index
      %c0_12 = arith.constant 0 : index
      %13 = vector.load %arg7[%c0_11, %c0_12] : memref<8x96xf32, #tpu.memory_space<vmem>>, vector<8x96xf32>
      tpu.vector_store %arg7[%c0_11, %c0_12], %12 {strides = array<i32>} : memref<8x96xf32, #tpu.memory_space<vmem>>, vector<8x96xf32>,
    } else {
    }
    %c0 = arith.constant 0 : index
    %c0_1 = arith.constant 0 : index
    %3 = vector.load %arg7[%c0, %c0_1] : memref<8x96xf32, #tpu.memory_space<vmem>>, vector<8x96xf32>
    %c0_2 = arith.constant 0 : index
    %c0_3 = arith.constant 0 : index
    %4 = vector.load %arg3[%c0_2, %c0_3] : memref<8x32xbf16, #tpu.memory_space<vmem>>, vector<8x32xbf16>
    %c0_4 = arith.constant 0 : index
    %c0_5 = arith.constant 0 : index
    %5 = vector.load %arg4[%c0_4, %c0_5] : memref<32x96xbf16, #tpu.memory_space<vmem>>, vector<32x96xbf16>
    %cst = arith.constant dense<0.000000e+00> : vector<8x96xf32>
    %6 = tpu.matmul %4, %5, %cst {dimension_numbers = #tpu.dot_dimension_numbers<[1], [0], [0], [1], [0, 0, 1, 1], [], []>} : vector<8x32xbf16>, vector<32x96xbf16>, vector<8x96xf32> -> vector<8x96xf32>
    %7 = arith.addf %3, %6 : vector<8x96xf32>
    %c0_6 = arith.constant 0 : index
    %c0_7 = arith.constant 0 : index
    %8 = vector.load %arg7[%c0_6, %c0_7] : memref<8x96xf32, #tpu.memory_space<vmem>>, vector<8x96xf32>
    tpu.vector_store %arg7[%c0_6, %c0_7], %7 {strides = array<i32>} : memref<8x96xf32, #tpu.memory_space<vmem>>, vector<8x96xf32>,
    %c0_i32_8 = arith.constant 0 : i32
    %9 = arith.cmpi eq, %arg2, %c0_i32_8 : i32
    %10 = arith.extui %9 : i1 to i32
    %c0_i32_9 = arith.constant 0 : i32
    %11 = arith.cmpi ne, %10, %c0_i32_9 : i32
    scf.if %11 {
      %c0_10 = arith.constant 0 : index
      %c0_11 = arith.constant 0 : index
      %12 = vector.load %arg7[%c0_10, %c0_11] : memref<8x96xf32, #tpu.memory_space<vmem>>, vector<8x96xf32>
      %c0_12 = arith.constant 0 : index
      %c0_13 = arith.constant 0 : index
      %13 = vector.load %arg5[%c0_12, %c0_13] : memref<1x96xf32, #tpu.memory_space<vmem>>, vector<1x96xf32>
      %14 = vector.broadcast %13 : vector<1x96xf32> to vector<8x96xf32>
      %15 = arith.addf %12, %14 : vector<8x96xf32>
      %16 = arith.truncf %15 : vector<8x96xf32> to vector<8x96xbf16>
      %c0_14 = arith.constant 0 : index
      %c0_15 = arith.constant 0 : index
      %17 = vector.load %arg6[%c0_14, %c0_15] : memref<8x96xbf16, #tpu.memory_space<vmem>>, vector<8x96xbf16>
      tpu.vector_store %arg6[%c0_14, %c0_15], %16 {strides = array<i32>} : memref<8x96xbf16, #tpu.memory_space<vmem>>, vector<8x96xbf16>,
    } else {
    }
    return
  }
  func.func @transform_0(%arg0: i32, %arg1: i32, %arg2: i32) -> (i32, i32) {
    %c0_i32 = arith.constant 0 : i32
    return %arg0, %arg2 : i32, i32
  }
  func.func @transform_1(%arg0: i32, %arg1: i32, %arg2: i32) -> (i32, i32) {
    %c0_i32 = arith.constant 0 : i32
    return %arg2, %arg1 : i32, i32
  }
  func.func @transform_2(%arg0: i32, %arg1: i32, %arg2: i32) -> (i32, i32) {
    %c0_i32 = arith.constant 0 : i32
    %c0_i32_0 = arith.constant 0 : i32
    return %c0_i32, %arg1 : i32, i32
  }
  func.func @transform_3(%arg0: i32, %arg1: i32, %arg2: i32) -> (i32, i32) {
    %c0_i32 = arith.constant 0 : i32
    return %arg0, %arg1 : i32, i32
  }
}

module attributes {stable_mosaic.version = 11 : i64} {
  func.func @_mha_self_kernel(%arg0: i32, %arg1: memref<8x96xbf16, #tpu.memory_space<vmem>>, %arg2: memref<8x32xbf16, #tpu.memory_space<vmem>>) attributes {dimension_semantics = [#tpu.dimension_semantics<parallel>], iteration_bounds = array<i64: 2>, scalar_prefetch = 0 : i64, scratch_operands = 0 : i64, tpu.core_type = #tpu.core_type<tc>, window_params = [{transform_indices = @transform_0, window_bounds = array<i64: 8, 96>}, {transform_indices = @transform_1, window_bounds = array<i64: 8, 32>}]} {
    %c0 = arith.constant 0 : index
    %c0_0 = arith.constant 0 : index
    %0 = vector.load %arg1[%c0, %c0_0] : memref<8x96xbf16, #tpu.memory_space<vmem>>, vector<8x96xbf16>
    %1 = vector.extract_strided_slice %0 {offsets = [0, 0], sizes = [8, 8], strides = [1, 1]} : vector<8x96xbf16> to vector<8x8xbf16>
    %2 = vector.extract_strided_slice %0 {offsets = [0, 32], sizes = [8, 8], strides = [1, 1]} : vector<8x96xbf16> to vector<8x8xbf16>
    %3 = vector.extract_strided_slice %0 {offsets = [0, 64], sizes = [8, 8], strides = [1, 1]} : vector<8x96xbf16> to vector<8x8xbf16>
    %cst = arith.constant dense<0.000000e+00> : vector<8x8xf32>
    %4 = tpu.matmul %1, %2, %cst {dimension_numbers = #tpu.dot_dimension_numbers<[1], [1], [0], [0], [0, 0, 1, 0], [], []>} : vector<8x8xbf16>, vector<8x8xbf16>, vector<8x8xf32> -> vector<8x8xf32>
    %cst_1 = arith.constant dense<0xFF800000> : vector<8xf32>
    %5 = vector.multi_reduction <maximumf>, %4, %cst_1 [1] : vector<8x8xf32> to vector<8xf32>
    %6 = vector.shape_cast %5 : vector<8xf32> to vector<8x1xf32>
    %7 = vector.broadcast %6 : vector<8x1xf32> to vector<8x8xf32>
    %8 = arith.subf %4, %7 : vector<8x8xf32>
    %9 = math.exp %8 : vector<8x8xf32>
    %cst_2 = arith.constant dense<0.000000e+00> : vector<8xf32>
    %10 = vector.multi_reduction <add>, %9, %cst_2 [1] : vector<8x8xf32> to vector<8xf32>
    %11 = vector.shape_cast %10 : vector<8xf32> to vector<8x1xf32>
    %12 = arith.truncf %9 : vector<8x8xf32> to vector<8x8xbf16>
    %cst_3 = arith.constant dense<0.000000e+00> : vector<8x8xf32>
    %13 = tpu.matmul %12, %3, %cst_3 {dimension_numbers = #tpu.dot_dimension_numbers<[1], [0], [0], [1], [0, 0, 1, 1], [], []>} : vector<8x8xbf16>, vector<8x8xbf16>, vector<8x8xf32> -> vector<8x8xf32>
    %14 = tpu.reciprocal %11 {approx = true} : vector<8x1xf32> -> vector<8x1xf32>
    %15 = vector.broadcast %14 : vector<8x1xf32> to vector<8x8xf32>
    %16 = arith.mulf %13, %15 : vector<8x8xf32>
    %17 = vector.extract_strided_slice %0 {offsets = [0, 8], sizes = [8, 8], strides = [1, 1]} : vector<8x96xbf16> to vector<8x8xbf16>
    %18 = vector.extract_strided_slice %0 {offsets = [0, 40], sizes = [8, 8], strides = [1, 1]} : vector<8x96xbf16> to vector<8x8xbf16>
    %19 = vector.extract_strided_slice %0 {offsets = [0, 72], sizes = [8, 8], strides = [1, 1]} : vector<8x96xbf16> to vector<8x8xbf16>
    %cst_4 = arith.constant dense<0.000000e+00> : vector<8x8xf32>
    %20 = tpu.matmul %17, %18, %cst_4 {dimension_numbers = #tpu.dot_dimension_numbers<[1], [1], [0], [0], [0, 0, 1, 0], [], []>} : vector<8x8xbf16>, vector<8x8xbf16>, vector<8x8xf32> -> vector<8x8xf32>
    %cst_5 = arith.constant dense<0xFF800000> : vector<8xf32>
    %21 = vector.multi_reduction <maximumf>, %20, %cst_5 [1] : vector<8x8xf32> to vector<8xf32>
    %22 = vector.shape_cast %21 : vector<8xf32> to vector<8x1xf32>
    %23 = vector.broadcast %22 : vector<8x1xf32> to vector<8x8xf32>
    %24 = arith.subf %20, %23 : vector<8x8xf32>
    %25 = math.exp %24 : vector<8x8xf32>
    %cst_6 = arith.constant dense<0.000000e+00> : vector<8xf32>
    %26 = vector.multi_reduction <add>, %25, %cst_6 [1] : vector<8x8xf32> to vector<8xf32>
    %27 = vector.shape_cast %26 : vector<8xf32> to vector<8x1xf32>
    %28 = arith.truncf %25 : vector<8x8xf32> to vector<8x8xbf16>
    %cst_7 = arith.constant dense<0.000000e+00> : vector<8x8xf32>
    %29 = tpu.matmul %28, %19, %cst_7 {dimension_numbers = #tpu.dot_dimension_numbers<[1], [0], [0], [1], [0, 0, 1, 1], [], []>} : vector<8x8xbf16>, vector<8x8xbf16>, vector<8x8xf32> -> vector<8x8xf32>
    %30 = tpu.reciprocal %27 {approx = true} : vector<8x1xf32> -> vector<8x1xf32>
    %31 = vector.broadcast %30 : vector<8x1xf32> to vector<8x8xf32>
    %32 = arith.mulf %29, %31 : vector<8x8xf32>
    %33 = vector.extract_strided_slice %0 {offsets = [0, 16], sizes = [8, 8], strides = [1, 1]} : vector<8x96xbf16> to vector<8x8xbf16>
    %34 = vector.extract_strided_slice %0 {offsets = [0, 48], sizes = [8, 8], strides = [1, 1]} : vector<8x96xbf16> to vector<8x8xbf16>
    %35 = vector.extract_strided_slice %0 {offsets = [0, 80], sizes = [8, 8], strides = [1, 1]} : vector<8x96xbf16> to vector<8x8xbf16>
    %cst_8 = arith.constant dense<0.000000e+00> : vector<8x8xf32>
    %36 = tpu.matmul %33, %34, %cst_8 {dimension_numbers = #tpu.dot_dimension_numbers<[1], [1], [0], [0], [0, 0, 1, 0], [], []>} : vector<8x8xbf16>, vector<8x8xbf16>, vector<8x8xf32> -> vector<8x8xf32>
    %cst_9 = arith.constant dense<0xFF800000> : vector<8xf32>
    %37 = vector.multi_reduction <maximumf>, %36, %cst_9 [1] : vector<8x8xf32> to vector<8xf32>
    %38 = vector.shape_cast %37 : vector<8xf32> to vector<8x1xf32>
    %39 = vector.broadcast %38 : vector<8x1xf32> to vector<8x8xf32>
    %40 = arith.subf %36, %39 : vector<8x8xf32>
    %41 = math.exp %40 : vector<8x8xf32>
    %cst_10 = arith.constant dense<0.000000e+00> : vector<8xf32>
    %42 = vector.multi_reduction <add>, %41, %cst_10 [1] : vector<8x8xf32> to vector<8xf32>
    %43 = vector.shape_cast %42 : vector<8xf32> to vector<8x1xf32>
    %44 = arith.truncf %41 : vector<8x8xf32> to vector<8x8xbf16>
    %cst_11 = arith.constant dense<0.000000e+00> : vector<8x8xf32>
    %45 = tpu.matmul %44, %35, %cst_11 {dimension_numbers = #tpu.dot_dimension_numbers<[1], [0], [0], [1], [0, 0, 1, 1], [], []>} : vector<8x8xbf16>, vector<8x8xbf16>, vector<8x8xf32> -> vector<8x8xf32>
    %46 = tpu.reciprocal %43 {approx = true} : vector<8x1xf32> -> vector<8x1xf32>
    %47 = vector.broadcast %46 : vector<8x1xf32> to vector<8x8xf32>
    %48 = arith.mulf %45, %47 : vector<8x8xf32>
    %49 = vector.extract_strided_slice %0 {offsets = [0, 24], sizes = [8, 8], strides = [1, 1]} : vector<8x96xbf16> to vector<8x8xbf16>
    %50 = vector.extract_strided_slice %0 {offsets = [0, 56], sizes = [8, 8], strides = [1, 1]} : vector<8x96xbf16> to vector<8x8xbf16>
    %51 = vector.extract_strided_slice %0 {offsets = [0, 88], sizes = [8, 8], strides = [1, 1]} : vector<8x96xbf16> to vector<8x8xbf16>
    %cst_12 = arith.constant dense<0.000000e+00> : vector<8x8xf32>
    %52 = tpu.matmul %49, %50, %cst_12 {dimension_numbers = #tpu.dot_dimension_numbers<[1], [1], [0], [0], [0, 0, 1, 0], [], []>} : vector<8x8xbf16>, vector<8x8xbf16>, vector<8x8xf32> -> vector<8x8xf32>
    %cst_13 = arith.constant dense<0xFF800000> : vector<8xf32>
    %53 = vector.multi_reduction <maximumf>, %52, %cst_13 [1] : vector<8x8xf32> to vector<8xf32>
    %54 = vector.shape_cast %53 : vector<8xf32> to vector<8x1xf32>
    %55 = vector.broadcast %54 : vector<8x1xf32> to vector<8x8xf32>
    %56 = arith.subf %52, %55 : vector<8x8xf32>
    %57 = math.exp %56 : vector<8x8xf32>
    %cst_14 = arith.constant dense<0.000000e+00> : vector<8xf32>
    %58 = vector.multi_reduction <add>, %57, %cst_14 [1] : vector<8x8xf32> to vector<8xf32>
    %59 = vector.shape_cast %58 : vector<8xf32> to vector<8x1xf32>
    %60 = arith.truncf %57 : vector<8x8xf32> to vector<8x8xbf16>
    %cst_15 = arith.constant dense<0.000000e+00> : vector<8x8xf32>
    %61 = tpu.matmul %60, %51, %cst_15 {dimension_numbers = #tpu.dot_dimension_numbers<[1], [0], [0], [1], [0, 0, 1, 1], [], []>} : vector<8x8xbf16>, vector<8x8xbf16>, vector<8x8xf32> -> vector<8x8xf32>
    %62 = tpu.reciprocal %59 {approx = true} : vector<8x1xf32> -> vector<8x1xf32>
    %63 = vector.broadcast %62 : vector<8x1xf32> to vector<8x8xf32>
    %64 = arith.mulf %61, %63 : vector<8x8xf32>
    %65 = tpu.concatenate %16, %32, %48, %64 in 1 : vector<8x8xf32>, vector<8x8xf32>, vector<8x8xf32>, vector<8x8xf32> -> vector<8x32xf32>
    %66 = arith.truncf %65 : vector<8x32xf32> to vector<8x32xbf16>
    %c0_16 = arith.constant 0 : index
    %c0_17 = arith.constant 0 : index
    %67 = vector.load %arg2[%c0_16, %c0_17] : memref<8x32xbf16, #tpu.memory_space<vmem>>, vector<8x32xbf16>
    tpu.vector_store %arg2[%c0_16, %c0_17], %66 {strides = array<i32>} : memref<8x32xbf16, #tpu.memory_space<vmem>>, vector<8x32xbf16>,
    return
  }
  func.func @transform_0(%arg0: i32) -> (i32, i32) {
    %c0_i32 = arith.constant 0 : i32
    %c0_i32_0 = arith.constant 0 : i32
    return %arg0, %c0_i32 : i32, i32
  }
  func.func @transform_1(%arg0: i32) -> (i32, i32) {
    %c0_i32 = arith.constant 0 : i32
    %c0_i32_0 = arith.constant 0 : i32
    return %arg0, %c0_i32 : i32, i32
  }
}

module attributes {stable_mosaic.version = 11 : i64} {
  func.func @_matmul_res_ln_kernel(%arg0: i32, %arg1: i32, %arg2: memref<8x32xbf16, #tpu.memory_space<vmem>>, %arg3: memref<32x32xbf16, #tpu.memory_space<vmem>>, %arg4: memref<1x32xf32, #tpu.memory_space<vmem>>, %arg5: memref<8x32xbf16, #tpu.memory_space<vmem>>, %arg6: memref<1x32xf32, #tpu.memory_space<vmem>>, %arg7: memref<1x32xf32, #tpu.memory_space<vmem>>, %arg8: memref<8x32xbf16, #tpu.memory_space<vmem>>, %arg9: memref<8x32xf32, #tpu.memory_space<vmem>>) attributes {dimension_semantics = [#tpu.dimension_semantics<parallel>, #tpu.dimension_semantics<arbitrary>], iteration_bounds = array<i64: 2, 1>, scalar_prefetch = 0 : i64, scratch_operands = 1 : i64, tpu.core_type = #tpu.core_type<tc>, window_params = [{transform_indices = @transform_0, window_bounds = array<i64: 8, 32>}, {transform_indices = @transform_1, window_bounds = array<i64: 32, 32>}, {pipeline_mode = #tpu.pipeline_mode<synchronous>, transform_indices = @transform_2, window_bounds = array<i64: 1, 32>}, {transform_indices = @transform_3, window_bounds = array<i64: 8, 32>}, {pipeline_mode = #tpu.pipeline_mode<synchronous>, transform_indices = @transform_4, window_bounds = array<i64: 1, 32>}, {pipeline_mode = #tpu.pipeline_mode<synchronous>, transform_indices = @transform_5, window_bounds = array<i64: 1, 32>}, {transform_indices = @transform_6, window_bounds = array<i64: 8, 32>}]} {
    %c0_i32 = arith.constant 0 : i32
    %0 = arith.cmpi eq, %arg1, %c0_i32 : i32
    %1 = arith.extui %0 : i1 to i32
    %c0_i32_0 = arith.constant 0 : i32
    %2 = arith.cmpi ne, %1, %c0_i32_0 : i32
    scf.if %2 {
      %cst_10 = arith.constant 0.000000e+00 : f32
      %12 = vector.broadcast %cst_10 : f32 to vector<8x32xf32>
      %c0_11 = arith.constant 0 : index
      %c0_12 = arith.constant 0 : index
      %13 = vector.load %arg9[%c0_11, %c0_12] : memref<8x32xf32, #tpu.memory_space<vmem>>, vector<8x32xf32>
      tpu.vector_store %arg9[%c0_11, %c0_12], %12 {strides = array<i32>} : memref<8x32xf32, #tpu.memory_space<vmem>>, vector<8x32xf32>,
    } else {
    }
    %c0 = arith.constant 0 : index
    %c0_1 = arith.constant 0 : index
    %3 = vector.load %arg9[%c0, %c0_1] : memref<8x32xf32, #tpu.memory_space<vmem>>, vector<8x32xf32>
    %c0_2 = arith.constant 0 : index
    %c0_3 = arith.constant 0 : index
    %4 = vector.load %arg2[%c0_2, %c0_3] : memref<8x32xbf16, #tpu.memory_space<vmem>>, vector<8x32xbf16>
    %c0_4 = arith.constant 0 : index
    %c0_5 = arith.constant 0 : index
    %5 = vector.load %arg3[%c0_4, %c0_5] : memref<32x32xbf16, #tpu.memory_space<vmem>>, vector<32x32xbf16>
    %cst = arith.constant dense<0.000000e+00> : vector<8x32xf32>
    %6 = tpu.matmul %4, %5, %cst {dimension_numbers = #tpu.dot_dimension_numbers<[1], [0], [0], [1], [0, 0, 1, 1], [], []>} : vector<8x32xbf16>, vector<32x32xbf16>, vector<8x32xf32> -> vector<8x32xf32>
    %7 = arith.addf %3, %6 : vector<8x32xf32>
    %c0_6 = arith.constant 0 : index
    %c0_7 = arith.constant 0 : index
    %8 = vector.load %arg9[%c0_6, %c0_7] : memref<8x32xf32, #tpu.memory_space<vmem>>, vector<8x32xf32>
    tpu.vector_store %arg9[%c0_6, %c0_7], %7 {strides = array<i32>} : memref<8x32xf32, #tpu.memory_space<vmem>>, vector<8x32xf32>,
    %c0_i32_8 = arith.constant 0 : i32
    %9 = arith.cmpi eq, %arg1, %c0_i32_8 : i32
    %10 = arith.extui %9 : i1 to i32
    %c0_i32_9 = arith.constant 0 : i32
    %11 = arith.cmpi ne, %10, %c0_i32_9 : i32
    scf.if %11 {
      %c0_10 = arith.constant 0 : index
      %c0_11 = arith.constant 0 : index
      %12 = vector.load %arg9[%c0_10, %c0_11] : memref<8x32xf32, #tpu.memory_space<vmem>>, vector<8x32xf32>
      %c0_12 = arith.constant 0 : index
      %c0_13 = arith.constant 0 : index
      %13 = vector.load %arg4[%c0_12, %c0_13] : memref<1x32xf32, #tpu.memory_space<vmem>>, vector<1x32xf32>
      %14 = vector.broadcast %13 : vector<1x32xf32> to vector<8x32xf32>
      %15 = arith.addf %12, %14 : vector<8x32xf32>
      %c0_14 = arith.constant 0 : index
      %c0_15 = arith.constant 0 : index
      %16 = vector.load %arg5[%c0_14, %c0_15] : memref<8x32xbf16, #tpu.memory_space<vmem>>, vector<8x32xbf16>
      %17 = arith.extf %16 : vector<8x32xbf16> to vector<8x32xf32>
      %18 = arith.addf %15, %17 : vector<8x32xf32>
      %cst_16 = arith.constant dense<0.000000e+00> : vector<8xf32>
      %19 = vector.multi_reduction <add>, %18, %cst_16 [1] : vector<8x32xf32> to vector<8xf32>
      %20 = vector.shape_cast %19 : vector<8xf32> to vector<8x1xf32>
      %cst_17 = arith.constant 3.200000e+01 : f32
      %21 = vector.broadcast %cst_17 : f32 to vector<8x1xf32>
      %22 = arith.divf %20, %21 : vector<8x1xf32>
      %23 = vector.broadcast %22 : vector<8x1xf32> to vector<8x32xf32>
      %24 = arith.subf %18, %23 : vector<8x32xf32>
      %25 = arith.mulf %24, %24 : vector<8x32xf32>
      %cst_18 = arith.constant dense<0.000000e+00> : vector<8xf32>
      %26 = vector.multi_reduction <add>, %25, %cst_18 [1] : vector<8x32xf32> to vector<8xf32>
      %27 = vector.shape_cast %26 : vector<8xf32> to vector<8x1xf32>
      %cst_19 = arith.constant 3.200000e+01 : f32
      %28 = vector.broadcast %cst_19 : f32 to vector<8x1xf32>
      %29 = arith.divf %27, %28 : vector<8x1xf32>
      %cst_20 = arith.constant 9.99999974E-6 : f32
      %30 = vector.broadcast %cst_20 : f32 to vector<8x1xf32>
      %31 = arith.addf %29, %30 : vector<8x1xf32>
      %32 = math.rsqrt %31 : vector<8x1xf32>
      %33 = vector.broadcast %32 : vector<8x1xf32> to vector<8x32xf32>
      %34 = arith.mulf %24, %33 : vector<8x32xf32>
      %c0_21 = arith.constant 0 : index
      %c0_22 = arith.constant 0 : index
      %35 = vector.load %arg6[%c0_21, %c0_22] : memref<1x32xf32, #tpu.memory_space<vmem>>, vector<1x32xf32>
      %36 = vector.broadcast %35 : vector<1x32xf32> to vector<8x32xf32>
      %37 = arith.mulf %34, %36 : vector<8x32xf32>
      %c0_23 = arith.constant 0 : index
      %c0_24 = arith.constant 0 : index
      %38 = vector.load %arg7[%c0_23, %c0_24] : memref<1x32xf32, #tpu.memory_space<vmem>>, vector<1x32xf32>
      %39 = vector.broadcast %38 : vector<1x32xf32> to vector<8x32xf32>
      %40 = arith.addf %37, %39 : vector<8x32xf32>
      %41 = arith.truncf %40 : vector<8x32xf32> to vector<8x32xbf16>
      %c0_25 = arith.constant 0 : index
      %c0_26 = arith.constant 0 : index
      %42 = vector.load %arg8[%c0_25, %c0_26] : memref<8x32xbf16, #tpu.memory_space<vmem>>, vector<8x32xbf16>
      tpu.vector_store %arg8[%c0_25, %c0_26], %41 {strides = array<i32>} : memref<8x32xbf16, #tpu.memory_space<vmem>>, vector<8x32xbf16>,
    } else {
    }
    return
  }
  func.func @transform_0(%arg0: i32, %arg1: i32) -> (i32, i32) {
    %c0_i32 = arith.constant 0 : i32
    return %arg0, %arg1 : i32, i32
  }
  func.func @transform_1(%arg0: i32, %arg1: i32) -> (i32, i32) {
    %c0_i32 = arith.constant 0 : i32
    %c0_i32_0 = arith.constant 0 : i32
    return %arg1, %c0_i32 : i32, i32
  }
  func.func @transform_2(%arg0: i32, %arg1: i32) -> (i32, i32) {
    %c0_i32 = arith.constant 0 : i32
    %c0_i32_0 = arith.constant 0 : i32
    %c0_i32_1 = arith.constant 0 : i32
    return %c0_i32, %c0_i32_0 : i32, i32
  }
  func.func @transform_3(%arg0: i32, %arg1: i32) -> (i32, i32) {
    %c0_i32 = arith.constant 0 : i32
    %c0_i32_0 = arith.constant 0 : i32
    return %arg0, %c0_i32 : i32, i32
  }
  func.func @transform_4(%arg0: i32, %arg1: i32) -> (i32, i32) {
    %c0_i32 = arith.constant 0 : i32
    %c0_i32_0 = arith.constant 0 : i32
    %c0_i32_1 = arith.constant 0 : i32
    return %c0_i32, %c0_i32_0 : i32, i32
  }
  func.func @transform_5(%arg0: i32, %arg1: i32) -> (i32, i32) {
    %c0_i32 = arith.constant 0 : i32
    %c0_i32_0 = arith.constant 0 : i32
    %c0_i32_1 = arith.constant 0 : i32
    return %c0_i32, %c0_i32_0 : i32, i32
  }
  func.func @transform_6(%arg0: i32, %arg1: i32) -> (i32, i32) {
    %c0_i32 = arith.constant 0 : i32
    %c0_i32_0 = arith.constant 0 : i32
    return %arg0, %c0_i32 : i32, i32
  }
}

module attributes {stable_mosaic.version = 11 : i64} {
  func.func @_matmul_kernel(%arg0: i32, %arg1: i32, %arg2: i32, %arg3: memref<8x32xbf16, #tpu.memory_space<vmem>>, %arg4: memref<32x64xbf16, #tpu.memory_space<vmem>>, %arg5: memref<1x64xf32, #tpu.memory_space<vmem>>, %arg6: memref<8x64xbf16, #tpu.memory_space<vmem>>, %arg7: memref<8x64xf32, #tpu.memory_space<vmem>>) attributes {dimension_semantics = [#tpu.dimension_semantics<parallel>, #tpu.dimension_semantics<parallel>, #tpu.dimension_semantics<arbitrary>], iteration_bounds = array<i64: 2, 1, 1>, scalar_prefetch = 0 : i64, scratch_operands = 1 : i64, tpu.core_type = #tpu.core_type<tc>, window_params = [{transform_indices = @transform_0, window_bounds = array<i64: 8, 32>}, {transform_indices = @transform_1, window_bounds = array<i64: 32, 64>}, {transform_indices = @transform_2, window_bounds = array<i64: 1, 64>}, {transform_indices = @transform_3, window_bounds = array<i64: 8, 64>}]} {
    %c0_i32 = arith.constant 0 : i32
    %0 = arith.cmpi eq, %arg2, %c0_i32 : i32
    %1 = arith.extui %0 : i1 to i32
    %c0_i32_0 = arith.constant 0 : i32
    %2 = arith.cmpi ne, %1, %c0_i32_0 : i32
    scf.if %2 {
      %cst_10 = arith.constant 0.000000e+00 : f32
      %12 = vector.broadcast %cst_10 : f32 to vector<8x64xf32>
      %c0_11 = arith.constant 0 : index
      %c0_12 = arith.constant 0 : index
      %13 = vector.load %arg7[%c0_11, %c0_12] : memref<8x64xf32, #tpu.memory_space<vmem>>, vector<8x64xf32>
      tpu.vector_store %arg7[%c0_11, %c0_12], %12 {strides = array<i32>} : memref<8x64xf32, #tpu.memory_space<vmem>>, vector<8x64xf32>,
    } else {
    }
    %c0 = arith.constant 0 : index
    %c0_1 = arith.constant 0 : index
    %3 = vector.load %arg7[%c0, %c0_1] : memref<8x64xf32, #tpu.memory_space<vmem>>, vector<8x64xf32>
    %c0_2 = arith.constant 0 : index
    %c0_3 = arith.constant 0 : index
    %4 = vector.load %arg3[%c0_2, %c0_3] : memref<8x32xbf16, #tpu.memory_space<vmem>>, vector<8x32xbf16>
    %c0_4 = arith.constant 0 : index
    %c0_5 = arith.constant 0 : index
    %5 = vector.load %arg4[%c0_4, %c0_5] : memref<32x64xbf16, #tpu.memory_space<vmem>>, vector<32x64xbf16>
    %cst = arith.constant dense<0.000000e+00> : vector<8x64xf32>
    %6 = tpu.matmul %4, %5, %cst {dimension_numbers = #tpu.dot_dimension_numbers<[1], [0], [0], [1], [0, 0, 1, 1], [], []>} : vector<8x32xbf16>, vector<32x64xbf16>, vector<8x64xf32> -> vector<8x64xf32>
    %7 = arith.addf %3, %6 : vector<8x64xf32>
    %c0_6 = arith.constant 0 : index
    %c0_7 = arith.constant 0 : index
    %8 = vector.load %arg7[%c0_6, %c0_7] : memref<8x64xf32, #tpu.memory_space<vmem>>, vector<8x64xf32>
    tpu.vector_store %arg7[%c0_6, %c0_7], %7 {strides = array<i32>} : memref<8x64xf32, #tpu.memory_space<vmem>>, vector<8x64xf32>,
    %c0_i32_8 = arith.constant 0 : i32
    %9 = arith.cmpi eq, %arg2, %c0_i32_8 : i32
    %10 = arith.extui %9 : i1 to i32
    %c0_i32_9 = arith.constant 0 : i32
    %11 = arith.cmpi ne, %10, %c0_i32_9 : i32
    scf.if %11 {
      %c0_10 = arith.constant 0 : index
      %c0_11 = arith.constant 0 : index
      %12 = vector.load %arg7[%c0_10, %c0_11] : memref<8x64xf32, #tpu.memory_space<vmem>>, vector<8x64xf32>
      %c0_12 = arith.constant 0 : index
      %c0_13 = arith.constant 0 : index
      %13 = vector.load %arg5[%c0_12, %c0_13] : memref<1x64xf32, #tpu.memory_space<vmem>>, vector<1x64xf32>
      %14 = vector.broadcast %13 : vector<1x64xf32> to vector<8x64xf32>
      %15 = arith.addf %12, %14 : vector<8x64xf32>
      %cst_14 = arith.constant 0.000000e+00 : f32
      %16 = vector.broadcast %cst_14 : f32 to vector<8x64xf32>
      %17 = arith.maximumf %15, %16 : vector<8x64xf32>
      %18 = arith.truncf %17 : vector<8x64xf32> to vector<8x64xbf16>
      %c0_15 = arith.constant 0 : index
      %c0_16 = arith.constant 0 : index
      %19 = vector.load %arg6[%c0_15, %c0_16] : memref<8x64xbf16, #tpu.memory_space<vmem>>, vector<8x64xbf16>
      tpu.vector_store %arg6[%c0_15, %c0_16], %18 {strides = array<i32>} : memref<8x64xbf16, #tpu.memory_space<vmem>>, vector<8x64xbf16>,
    } else {
    }
    return
  }
  func.func @transform_0(%arg0: i32, %arg1: i32, %arg2: i32) -> (i32, i32) {
    %c0_i32 = arith.constant 0 : i32
    return %arg0, %arg2 : i32, i32
  }
  func.func @transform_1(%arg0: i32, %arg1: i32, %arg2: i32) -> (i32, i32) {
    %c0_i32 = arith.constant 0 : i32
    return %arg2, %arg1 : i32, i32
  }
  func.func @transform_2(%arg0: i32, %arg1: i32, %arg2: i32) -> (i32, i32) {
    %c0_i32 = arith.constant 0 : i32
    %c0_i32_0 = arith.constant 0 : i32
    return %c0_i32, %arg1 : i32, i32
  }
  func.func @transform_3(%arg0: i32, %arg1: i32, %arg2: i32) -> (i32, i32) {
    %c0_i32 = arith.constant 0 : i32
    return %arg0, %arg1 : i32, i32
  }
}

module attributes {stable_mosaic.version = 11 : i64} {
  func.func @_matmul_res_ln_kernel(%arg0: i32, %arg1: i32, %arg2: memref<8x64xbf16, #tpu.memory_space<vmem>>, %arg3: memref<64x32xbf16, #tpu.memory_space<vmem>>, %arg4: memref<1x32xf32, #tpu.memory_space<vmem>>, %arg5: memref<8x32xbf16, #tpu.memory_space<vmem>>, %arg6: memref<1x32xf32, #tpu.memory_space<vmem>>, %arg7: memref<1x32xf32, #tpu.memory_space<vmem>>, %arg8: memref<8x32xbf16, #tpu.memory_space<vmem>>, %arg9: memref<8x32xf32, #tpu.memory_space<vmem>>) attributes {dimension_semantics = [#tpu.dimension_semantics<parallel>, #tpu.dimension_semantics<arbitrary>], iteration_bounds = array<i64: 2, 1>, scalar_prefetch = 0 : i64, scratch_operands = 1 : i64, tpu.core_type = #tpu.core_type<tc>, window_params = [{transform_indices = @transform_0, window_bounds = array<i64: 8, 64>}, {transform_indices = @transform_1, window_bounds = array<i64: 64, 32>}, {pipeline_mode = #tpu.pipeline_mode<synchronous>, transform_indices = @transform_2, window_bounds = array<i64: 1, 32>}, {transform_indices = @transform_3, window_bounds = array<i64: 8, 32>}, {pipeline_mode = #tpu.pipeline_mode<synchronous>, transform_indices = @transform_4, window_bounds = array<i64: 1, 32>}, {pipeline_mode = #tpu.pipeline_mode<synchronous>, transform_indices = @transform_5, window_bounds = array<i64: 1, 32>}, {transform_indices = @transform_6, window_bounds = array<i64: 8, 32>}]} {
    %c0_i32 = arith.constant 0 : i32
    %0 = arith.cmpi eq, %arg1, %c0_i32 : i32
    %1 = arith.extui %0 : i1 to i32
    %c0_i32_0 = arith.constant 0 : i32
    %2 = arith.cmpi ne, %1, %c0_i32_0 : i32
    scf.if %2 {
      %cst_10 = arith.constant 0.000000e+00 : f32
      %12 = vector.broadcast %cst_10 : f32 to vector<8x32xf32>
      %c0_11 = arith.constant 0 : index
      %c0_12 = arith.constant 0 : index
      %13 = vector.load %arg9[%c0_11, %c0_12] : memref<8x32xf32, #tpu.memory_space<vmem>>, vector<8x32xf32>
      tpu.vector_store %arg9[%c0_11, %c0_12], %12 {strides = array<i32>} : memref<8x32xf32, #tpu.memory_space<vmem>>, vector<8x32xf32>,
    } else {
    }
    %c0 = arith.constant 0 : index
    %c0_1 = arith.constant 0 : index
    %3 = vector.load %arg9[%c0, %c0_1] : memref<8x32xf32, #tpu.memory_space<vmem>>, vector<8x32xf32>
    %c0_2 = arith.constant 0 : index
    %c0_3 = arith.constant 0 : index
    %4 = vector.load %arg2[%c0_2, %c0_3] : memref<8x64xbf16, #tpu.memory_space<vmem>>, vector<8x64xbf16>
    %c0_4 = arith.constant 0 : index
    %c0_5 = arith.constant 0 : index
    %5 = vector.load %arg3[%c0_4, %c0_5] : memref<64x32xbf16, #tpu.memory_space<vmem>>, vector<64x32xbf16>
    %cst = arith.constant dense<0.000000e+00> : vector<8x32xf32>
    %6 = tpu.matmul %4, %5, %cst {dimension_numbers = #tpu.dot_dimension_numbers<[1], [0], [0], [1], [0, 0, 1, 1], [], []>} : vector<8x64xbf16>, vector<64x32xbf16>, vector<8x32xf32> -> vector<8x32xf32>
    %7 = arith.addf %3, %6 : vector<8x32xf32>
    %c0_6 = arith.constant 0 : index
    %c0_7 = arith.constant 0 : index
    %8 = vector.load %arg9[%c0_6, %c0_7] : memref<8x32xf32, #tpu.memory_space<vmem>>, vector<8x32xf32>
    tpu.vector_store %arg9[%c0_6, %c0_7], %7 {strides = array<i32>} : memref<8x32xf32, #tpu.memory_space<vmem>>, vector<8x32xf32>,
    %c0_i32_8 = arith.constant 0 : i32
    %9 = arith.cmpi eq, %arg1, %c0_i32_8 : i32
    %10 = arith.extui %9 : i1 to i32
    %c0_i32_9 = arith.constant 0 : i32
    %11 = arith.cmpi ne, %10, %c0_i32_9 : i32
    scf.if %11 {
      %c0_10 = arith.constant 0 : index
      %c0_11 = arith.constant 0 : index
      %12 = vector.load %arg9[%c0_10, %c0_11] : memref<8x32xf32, #tpu.memory_space<vmem>>, vector<8x32xf32>
      %c0_12 = arith.constant 0 : index
      %c0_13 = arith.constant 0 : index
      %13 = vector.load %arg4[%c0_12, %c0_13] : memref<1x32xf32, #tpu.memory_space<vmem>>, vector<1x32xf32>
      %14 = vector.broadcast %13 : vector<1x32xf32> to vector<8x32xf32>
      %15 = arith.addf %12, %14 : vector<8x32xf32>
      %c0_14 = arith.constant 0 : index
      %c0_15 = arith.constant 0 : index
      %16 = vector.load %arg5[%c0_14, %c0_15] : memref<8x32xbf16, #tpu.memory_space<vmem>>, vector<8x32xbf16>
      %17 = arith.extf %16 : vector<8x32xbf16> to vector<8x32xf32>
      %18 = arith.addf %15, %17 : vector<8x32xf32>
      %cst_16 = arith.constant dense<0.000000e+00> : vector<8xf32>
      %19 = vector.multi_reduction <add>, %18, %cst_16 [1] : vector<8x32xf32> to vector<8xf32>
      %20 = vector.shape_cast %19 : vector<8xf32> to vector<8x1xf32>
      %cst_17 = arith.constant 3.200000e+01 : f32
      %21 = vector.broadcast %cst_17 : f32 to vector<8x1xf32>
      %22 = arith.divf %20, %21 : vector<8x1xf32>
      %23 = vector.broadcast %22 : vector<8x1xf32> to vector<8x32xf32>
      %24 = arith.subf %18, %23 : vector<8x32xf32>
      %25 = arith.mulf %24, %24 : vector<8x32xf32>
      %cst_18 = arith.constant dense<0.000000e+00> : vector<8xf32>
      %26 = vector.multi_reduction <add>, %25, %cst_18 [1] : vector<8x32xf32> to vector<8xf32>
      %27 = vector.shape_cast %26 : vector<8xf32> to vector<8x1xf32>
      %cst_19 = arith.constant 3.200000e+01 : f32
      %28 = vector.broadcast %cst_19 : f32 to vector<8x1xf32>
      %29 = arith.divf %27, %28 : vector<8x1xf32>
      %cst_20 = arith.constant 9.99999974E-6 : f32
      %30 = vector.broadcast %cst_20 : f32 to vector<8x1xf32>
      %31 = arith.addf %29, %30 : vector<8x1xf32>
      %32 = math.rsqrt %31 : vector<8x1xf32>
      %33 = vector.broadcast %32 : vector<8x1xf32> to vector<8x32xf32>
      %34 = arith.mulf %24, %33 : vector<8x32xf32>
      %c0_21 = arith.constant 0 : index
      %c0_22 = arith.constant 0 : index
      %35 = vector.load %arg6[%c0_21, %c0_22] : memref<1x32xf32, #tpu.memory_space<vmem>>, vector<1x32xf32>
      %36 = vector.broadcast %35 : vector<1x32xf32> to vector<8x32xf32>
      %37 = arith.mulf %34, %36 : vector<8x32xf32>
      %c0_23 = arith.constant 0 : index
      %c0_24 = arith.constant 0 : index
      %38 = vector.load %arg7[%c0_23, %c0_24] : memref<1x32xf32, #tpu.memory_space<vmem>>, vector<1x32xf32>
      %39 = vector.broadcast %38 : vector<1x32xf32> to vector<8x32xf32>
      %40 = arith.addf %37, %39 : vector<8x32xf32>
      %41 = arith.truncf %40 : vector<8x32xf32> to vector<8x32xbf16>
      %c0_25 = arith.constant 0 : index
      %c0_26 = arith.constant 0 : index
      %42 = vector.load %arg8[%c0_25, %c0_26] : memref<8x32xbf16, #tpu.memory_space<vmem>>, vector<8x32xbf16>
      tpu.vector_store %arg8[%c0_25, %c0_26], %41 {strides = array<i32>} : memref<8x32xbf16, #tpu.memory_space<vmem>>, vector<8x32xbf16>,
    } else {
    }
    return
  }
  func.func @transform_0(%arg0: i32, %arg1: i32) -> (i32, i32) {
    %c0_i32 = arith.constant 0 : i32
    return %arg0, %arg1 : i32, i32
  }
  func.func @transform_1(%arg0: i32, %arg1: i32) -> (i32, i32) {
    %c0_i32 = arith.constant 0 : i32
    %c0_i32_0 = arith.constant 0 : i32
    return %arg1, %c0_i32 : i32, i32
  }
  func.func @transform_2(%arg0: i32, %arg1: i32) -> (i32, i32) {
    %c0_i32 = arith.constant 0 : i32
    %c0_i32_0 = arith.constant 0 : i32
    %c0_i32_1 = arith.constant 0 : i32
    return %c0_i32, %c0_i32_0 : i32, i32
  }
  func.func @transform_3(%arg0: i32, %arg1: i32) -> (i32, i32) {
    %c0_i32 = arith.constant 0 : i32
    %c0_i32_0 = arith.constant 0 : i32
    return %arg0, %c0_i32 : i32, i32
  }
  func.func @transform_4(%arg0: i32, %arg1: i32) -> (i32, i32) {
    %c0_i32 = arith.constant 0 : i32
    %c0_i32_0 = arith.constant 0 : i32
    %c0_i32_1 = arith.constant 0 : i32
    return %c0_i32, %c0_i32_0 : i32, i32
  }
  func.func @transform_5(%arg0: i32, %arg1: i32) -> (i32, i32) {
    %c0_i32 = arith.constant 0 : i32
    %c0_i32_0 = arith.constant 0 : i32
    %c0_i32_1 = arith.constant 0 : i32
    return %c0_i32, %c0_i32_0 : i32, i32
  }
  func.func @transform_6(%arg0: i32, %arg1: i32) -> (i32, i32) {
    %c0_i32 = arith.constant 0 : i32
    %c0_i32_0 = arith.constant 0 : i32
    return %arg0, %c0_i32 : i32, i32
  }
}

module attributes {stable_mosaic.version = 11 : i64} {
  func.func @_matmul_kernel(%arg0: i32, %arg1: i32, %arg2: i32, %arg3: memref<8x32xbf16, #tpu.memory_space<vmem>>, %arg4: memref<32x64xbf16, #tpu.memory_space<vmem>>, %arg5: memref<1x64xf32, #tpu.memory_space<vmem>>, %arg6: memref<8x64xbf16, #tpu.memory_space<vmem>>, %arg7: memref<8x64xf32, #tpu.memory_space<vmem>>) attributes {dimension_semantics = [#tpu.dimension_semantics<parallel>, #tpu.dimension_semantics<parallel>, #tpu.dimension_semantics<arbitrary>], iteration_bounds = array<i64: 2, 1, 1>, scalar_prefetch = 0 : i64, scratch_operands = 1 : i64, tpu.core_type = #tpu.core_type<tc>, window_params = [{transform_indices = @transform_0, window_bounds = array<i64: 8, 32>}, {transform_indices = @transform_1, window_bounds = array<i64: 32, 64>}, {transform_indices = @transform_2, window_bounds = array<i64: 1, 64>}, {transform_indices = @transform_3, window_bounds = array<i64: 8, 64>}]} {
    %c0_i32 = arith.constant 0 : i32
    %0 = arith.cmpi eq, %arg2, %c0_i32 : i32
    %1 = arith.extui %0 : i1 to i32
    %c0_i32_0 = arith.constant 0 : i32
    %2 = arith.cmpi ne, %1, %c0_i32_0 : i32
    scf.if %2 {
      %cst_10 = arith.constant 0.000000e+00 : f32
      %12 = vector.broadcast %cst_10 : f32 to vector<8x64xf32>
      %c0_11 = arith.constant 0 : index
      %c0_12 = arith.constant 0 : index
      %13 = vector.load %arg7[%c0_11, %c0_12] : memref<8x64xf32, #tpu.memory_space<vmem>>, vector<8x64xf32>
      tpu.vector_store %arg7[%c0_11, %c0_12], %12 {strides = array<i32>} : memref<8x64xf32, #tpu.memory_space<vmem>>, vector<8x64xf32>,
    } else {
    }
    %c0 = arith.constant 0 : index
    %c0_1 = arith.constant 0 : index
    %3 = vector.load %arg7[%c0, %c0_1] : memref<8x64xf32, #tpu.memory_space<vmem>>, vector<8x64xf32>
    %c0_2 = arith.constant 0 : index
    %c0_3 = arith.constant 0 : index
    %4 = vector.load %arg3[%c0_2, %c0_3] : memref<8x32xbf16, #tpu.memory_space<vmem>>, vector<8x32xbf16>
    %c0_4 = arith.constant 0 : index
    %c0_5 = arith.constant 0 : index
    %5 = vector.load %arg4[%c0_4, %c0_5] : memref<32x64xbf16, #tpu.memory_space<vmem>>, vector<32x64xbf16>
    %cst = arith.constant dense<0.000000e+00> : vector<8x64xf32>
    %6 = tpu.matmul %4, %5, %cst {dimension_numbers = #tpu.dot_dimension_numbers<[1], [0], [0], [1], [0, 0, 1, 1], [], []>} : vector<8x32xbf16>, vector<32x64xbf16>, vector<8x64xf32> -> vector<8x64xf32>
    %7 = arith.addf %3, %6 : vector<8x64xf32>
    %c0_6 = arith.constant 0 : index
    %c0_7 = arith.constant 0 : index
    %8 = vector.load %arg7[%c0_6, %c0_7] : memref<8x64xf32, #tpu.memory_space<vmem>>, vector<8x64xf32>
    tpu.vector_store %arg7[%c0_6, %c0_7], %7 {strides = array<i32>} : memref<8x64xf32, #tpu.memory_space<vmem>>, vector<8x64xf32>,
    %c0_i32_8 = arith.constant 0 : i32
    %9 = arith.cmpi eq, %arg2, %c0_i32_8 : i32
    %10 = arith.extui %9 : i1 to i32
    %c0_i32_9 = arith.constant 0 : i32
    %11 = arith.cmpi ne, %10, %c0_i32_9 : i32
    scf.if %11 {
      %c0_10 = arith.constant 0 : index
      %c0_11 = arith.constant 0 : index
      %12 = vector.load %arg7[%c0_10, %c0_11] : memref<8x64xf32, #tpu.memory_space<vmem>>, vector<8x64xf32>
      %c0_12 = arith.constant 0 : index
      %c0_13 = arith.constant 0 : index
      %13 = vector.load %arg5[%c0_12, %c0_13] : memref<1x64xf32, #tpu.memory_space<vmem>>, vector<1x64xf32>
      %14 = vector.broadcast %13 : vector<1x64xf32> to vector<8x64xf32>
      %15 = arith.addf %12, %14 : vector<8x64xf32>
      %16 = arith.truncf %15 : vector<8x64xf32> to vector<8x64xbf16>
      %c0_14 = arith.constant 0 : index
      %c0_15 = arith.constant 0 : index
      %17 = vector.load %arg6[%c0_14, %c0_15] : memref<8x64xbf16, #tpu.memory_space<vmem>>, vector<8x64xbf16>
      tpu.vector_store %arg6[%c0_14, %c0_15], %16 {strides = array<i32>} : memref<8x64xbf16, #tpu.memory_space<vmem>>, vector<8x64xbf16>,
    } else {
    }
    return
  }
  func.func @transform_0(%arg0: i32, %arg1: i32, %arg2: i32) -> (i32, i32) {
    %c0_i32 = arith.constant 0 : i32
    return %arg0, %arg2 : i32, i32
  }
  func.func @transform_1(%arg0: i32, %arg1: i32, %arg2: i32) -> (i32, i32) {
    %c0_i32 = arith.constant 0 : i32
    return %arg2, %arg1 : i32, i32
  }
  func.func @transform_2(%arg0: i32, %arg1: i32, %arg2: i32) -> (i32, i32) {
    %c0_i32 = arith.constant 0 : i32
    %c0_i32_0 = arith.constant 0 : i32
    return %c0_i32, %arg1 : i32, i32
  }
  func.func @transform_3(%arg0: i32, %arg1: i32, %arg2: i32) -> (i32, i32) {
    %c0_i32 = arith.constant 0 : i32
    return %arg0, %arg1 : i32, i32
  }
}

module attributes {stable_mosaic.version = 11 : i64} {
  func.func @_matmul_kernel(%arg0: i32, %arg1: i32, %arg2: i32, %arg3: memref<8x32xbf16, #tpu.memory_space<vmem>>, %arg4: memref<32x32xbf16, #tpu.memory_space<vmem>>, %arg5: memref<1x32xf32, #tpu.memory_space<vmem>>, %arg6: memref<8x32xbf16, #tpu.memory_space<vmem>>, %arg7: memref<8x32xf32, #tpu.memory_space<vmem>>) attributes {dimension_semantics = [#tpu.dimension_semantics<parallel>, #tpu.dimension_semantics<parallel>, #tpu.dimension_semantics<arbitrary>], iteration_bounds = array<i64: 2, 1, 1>, scalar_prefetch = 0 : i64, scratch_operands = 1 : i64, tpu.core_type = #tpu.core_type<tc>, window_params = [{transform_indices = @transform_0, window_bounds = array<i64: 8, 32>}, {transform_indices = @transform_1, window_bounds = array<i64: 32, 32>}, {transform_indices = @transform_2, window_bounds = array<i64: 1, 32>}, {transform_indices = @transform_3, window_bounds = array<i64: 8, 32>}]} {
    %c0_i32 = arith.constant 0 : i32
    %0 = arith.cmpi eq, %arg2, %c0_i32 : i32
    %1 = arith.extui %0 : i1 to i32
    %c0_i32_0 = arith.constant 0 : i32
    %2 = arith.cmpi ne, %1, %c0_i32_0 : i32
    scf.if %2 {
      %cst_10 = arith.constant 0.000000e+00 : f32
      %12 = vector.broadcast %cst_10 : f32 to vector<8x32xf32>
      %c0_11 = arith.constant 0 : index
      %c0_12 = arith.constant 0 : index
      %13 = vector.load %arg7[%c0_11, %c0_12] : memref<8x32xf32, #tpu.memory_space<vmem>>, vector<8x32xf32>
      tpu.vector_store %arg7[%c0_11, %c0_12], %12 {strides = array<i32>} : memref<8x32xf32, #tpu.memory_space<vmem>>, vector<8x32xf32>,
    } else {
    }
    %c0 = arith.constant 0 : index
    %c0_1 = arith.constant 0 : index
    %3 = vector.load %arg7[%c0, %c0_1] : memref<8x32xf32, #tpu.memory_space<vmem>>, vector<8x32xf32>
    %c0_2 = arith.constant 0 : index
    %c0_3 = arith.constant 0 : index
    %4 = vector.load %arg3[%c0_2, %c0_3] : memref<8x32xbf16, #tpu.memory_space<vmem>>, vector<8x32xbf16>
    %c0_4 = arith.constant 0 : index
    %c0_5 = arith.constant 0 : index
    %5 = vector.load %arg4[%c0_4, %c0_5] : memref<32x32xbf16, #tpu.memory_space<vmem>>, vector<32x32xbf16>
    %cst = arith.constant dense<0.000000e+00> : vector<8x32xf32>
    %6 = tpu.matmul %4, %5, %cst {dimension_numbers = #tpu.dot_dimension_numbers<[1], [0], [0], [1], [0, 0, 1, 1], [], []>} : vector<8x32xbf16>, vector<32x32xbf16>, vector<8x32xf32> -> vector<8x32xf32>
    %7 = arith.addf %3, %6 : vector<8x32xf32>
    %c0_6 = arith.constant 0 : index
    %c0_7 = arith.constant 0 : index
    %8 = vector.load %arg7[%c0_6, %c0_7] : memref<8x32xf32, #tpu.memory_space<vmem>>, vector<8x32xf32>
    tpu.vector_store %arg7[%c0_6, %c0_7], %7 {strides = array<i32>} : memref<8x32xf32, #tpu.memory_space<vmem>>, vector<8x32xf32>,
    %c0_i32_8 = arith.constant 0 : i32
    %9 = arith.cmpi eq, %arg2, %c0_i32_8 : i32
    %10 = arith.extui %9 : i1 to i32
    %c0_i32_9 = arith.constant 0 : i32
    %11 = arith.cmpi ne, %10, %c0_i32_9 : i32
    scf.if %11 {
      %c0_10 = arith.constant 0 : index
      %c0_11 = arith.constant 0 : index
      %12 = vector.load %arg7[%c0_10, %c0_11] : memref<8x32xf32, #tpu.memory_space<vmem>>, vector<8x32xf32>
      %c0_12 = arith.constant 0 : index
      %c0_13 = arith.constant 0 : index
      %13 = vector.load %arg5[%c0_12, %c0_13] : memref<1x32xf32, #tpu.memory_space<vmem>>, vector<1x32xf32>
      %14 = vector.broadcast %13 : vector<1x32xf32> to vector<8x32xf32>
      %15 = arith.addf %12, %14 : vector<8x32xf32>
      %16 = arith.truncf %15 : vector<8x32xf32> to vector<8x32xbf16>
      %c0_14 = arith.constant 0 : index
      %c0_15 = arith.constant 0 : index
      %17 = vector.load %arg6[%c0_14, %c0_15] : memref<8x32xbf16, #tpu.memory_space<vmem>>, vector<8x32xbf16>
      tpu.vector_store %arg6[%c0_14, %c0_15], %16 {strides = array<i32>} : memref<8x32xbf16, #tpu.memory_space<vmem>>, vector<8x32xbf16>,
    } else {
    }
    return
  }
  func.func @transform_0(%arg0: i32, %arg1: i32, %arg2: i32) -> (i32, i32) {
    %c0_i32 = arith.constant 0 : i32
    return %arg0, %arg2 : i32, i32
  }
  func.func @transform_1(%arg0: i32, %arg1: i32, %arg2: i32) -> (i32, i32) {
    %c0_i32 = arith.constant 0 : i32
    return %arg2, %arg1 : i32, i32
  }
  func.func @transform_2(%arg0: i32, %arg1: i32, %arg2: i32) -> (i32, i32) {
    %c0_i32 = arith.constant 0 : i32
    %c0_i32_0 = arith.constant 0 : i32
    return %c0_i32, %arg1 : i32, i32
  }
  func.func @transform_3(%arg0: i32, %arg1: i32, %arg2: i32) -> (i32, i32) {
    %c0_i32 = arith.constant 0 : i32
    return %arg0, %arg1 : i32, i32
  }
}

module attributes {stable_mosaic.version = 11 : i64} {
  func.func @_mha_cross_kernel(%arg0: i32, %arg1: memref<8x32xbf16, #tpu.memory_space<vmem>>, %arg2: memref<8x64xbf16, #tpu.memory_space<vmem>>, %arg3: memref<8x32xbf16, #tpu.memory_space<vmem>>) attributes {dimension_semantics = [#tpu.dimension_semantics<parallel>], iteration_bounds = array<i64: 2>, scalar_prefetch = 0 : i64, scratch_operands = 0 : i64, tpu.core_type = #tpu.core_type<tc>, window_params = [{transform_indices = @transform_0, window_bounds = array<i64: 8, 32>}, {transform_indices = @transform_1, window_bounds = array<i64: 8, 64>}, {transform_indices = @transform_2, window_bounds = array<i64: 8, 32>}]} {
    %c0 = arith.constant 0 : index
    %c0_0 = arith.constant 0 : index
    %0 = vector.load %arg1[%c0, %c0_0] : memref<8x32xbf16, #tpu.memory_space<vmem>>, vector<8x32xbf16>
    %c0_1 = arith.constant 0 : index
    %c0_2 = arith.constant 0 : index
    %1 = vector.load %arg2[%c0_1, %c0_2] : memref<8x64xbf16, #tpu.memory_space<vmem>>, vector<8x64xbf16>
    %2 = vector.extract_strided_slice %0 {offsets = [0, 0], sizes = [8, 8], strides = [1, 1]} : vector<8x32xbf16> to vector<8x8xbf16>
    %3 = vector.extract_strided_slice %1 {offsets = [0, 0], sizes = [8, 8], strides = [1, 1]} : vector<8x64xbf16> to vector<8x8xbf16>
    %4 = vector.extract_strided_slice %1 {offsets = [0, 32], sizes = [8, 8], strides = [1, 1]} : vector<8x64xbf16> to vector<8x8xbf16>
    %cst = arith.constant dense<0.000000e+00> : vector<8x8xf32>
    %5 = tpu.matmul %2, %3, %cst {dimension_numbers = #tpu.dot_dimension_numbers<[1], [1], [0], [0], [0, 0, 1, 0], [], []>} : vector<8x8xbf16>, vector<8x8xbf16>, vector<8x8xf32> -> vector<8x8xf32>
    %cst_3 = arith.constant dense<0xFF800000> : vector<8xf32>
    %6 = vector.multi_reduction <maximumf>, %5, %cst_3 [1] : vector<8x8xf32> to vector<8xf32>
    %7 = vector.shape_cast %6 : vector<8xf32> to vector<8x1xf32>
    %8 = vector.broadcast %7 : vector<8x1xf32> to vector<8x8xf32>
    %9 = arith.subf %5, %8 : vector<8x8xf32>
    %10 = math.exp %9 : vector<8x8xf32>
    %cst_4 = arith.constant dense<0.000000e+00> : vector<8xf32>
    %11 = vector.multi_reduction <add>, %10, %cst_4 [1] : vector<8x8xf32> to vector<8xf32>
    %12 = vector.shape_cast %11 : vector<8xf32> to vector<8x1xf32>
    %13 = arith.truncf %10 : vector<8x8xf32> to vector<8x8xbf16>
    %cst_5 = arith.constant dense<0.000000e+00> : vector<8x8xf32>
    %14 = tpu.matmul %13, %4, %cst_5 {dimension_numbers = #tpu.dot_dimension_numbers<[1], [0], [0], [1], [0, 0, 1, 1], [], []>} : vector<8x8xbf16>, vector<8x8xbf16>, vector<8x8xf32> -> vector<8x8xf32>
    %15 = tpu.reciprocal %12 {approx = true} : vector<8x1xf32> -> vector<8x1xf32>
    %16 = vector.broadcast %15 : vector<8x1xf32> to vector<8x8xf32>
    %17 = arith.mulf %14, %16 : vector<8x8xf32>
    %18 = vector.extract_strided_slice %0 {offsets = [0, 8], sizes = [8, 8], strides = [1, 1]} : vector<8x32xbf16> to vector<8x8xbf16>
    %19 = vector.extract_strided_slice %1 {offsets = [0, 8], sizes = [8, 8], strides = [1, 1]} : vector<8x64xbf16> to vector<8x8xbf16>
    %20 = vector.extract_strided_slice %1 {offsets = [0, 40], sizes = [8, 8], strides = [1, 1]} : vector<8x64xbf16> to vector<8x8xbf16>
    %cst_6 = arith.constant dense<0.000000e+00> : vector<8x8xf32>
    %21 = tpu.matmul %18, %19, %cst_6 {dimension_numbers = #tpu.dot_dimension_numbers<[1], [1], [0], [0], [0, 0, 1, 0], [], []>} : vector<8x8xbf16>, vector<8x8xbf16>, vector<8x8xf32> -> vector<8x8xf32>
    %cst_7 = arith.constant dense<0xFF800000> : vector<8xf32>
    %22 = vector.multi_reduction <maximumf>, %21, %cst_7 [1] : vector<8x8xf32> to vector<8xf32>
    %23 = vector.shape_cast %22 : vector<8xf32> to vector<8x1xf32>
    %24 = vector.broadcast %23 : vector<8x1xf32> to vector<8x8xf32>
    %25 = arith.subf %21, %24 : vector<8x8xf32>
    %26 = math.exp %25 : vector<8x8xf32>
    %cst_8 = arith.constant dense<0.000000e+00> : vector<8xf32>
    %27 = vector.multi_reduction <add>, %26, %cst_8 [1] : vector<8x8xf32> to vector<8xf32>
    %28 = vector.shape_cast %27 : vector<8xf32> to vector<8x1xf32>
    %29 = arith.truncf %26 : vector<8x8xf32> to vector<8x8xbf16>
    %cst_9 = arith.constant dense<0.000000e+00> : vector<8x8xf32>
    %30 = tpu.matmul %29, %20, %cst_9 {dimension_numbers = #tpu.dot_dimension_numbers<[1], [0], [0], [1], [0, 0, 1, 1], [], []>} : vector<8x8xbf16>, vector<8x8xbf16>, vector<8x8xf32> -> vector<8x8xf32>
    %31 = tpu.reciprocal %28 {approx = true} : vector<8x1xf32> -> vector<8x1xf32>
    %32 = vector.broadcast %31 : vector<8x1xf32> to vector<8x8xf32>
    %33 = arith.mulf %30, %32 : vector<8x8xf32>
    %34 = vector.extract_strided_slice %0 {offsets = [0, 16], sizes = [8, 8], strides = [1, 1]} : vector<8x32xbf16> to vector<8x8xbf16>
    %35 = vector.extract_strided_slice %1 {offsets = [0, 16], sizes = [8, 8], strides = [1, 1]} : vector<8x64xbf16> to vector<8x8xbf16>
    %36 = vector.extract_strided_slice %1 {offsets = [0, 48], sizes = [8, 8], strides = [1, 1]} : vector<8x64xbf16> to vector<8x8xbf16>
    %cst_10 = arith.constant dense<0.000000e+00> : vector<8x8xf32>
    %37 = tpu.matmul %34, %35, %cst_10 {dimension_numbers = #tpu.dot_dimension_numbers<[1], [1], [0], [0], [0, 0, 1, 0], [], []>} : vector<8x8xbf16>, vector<8x8xbf16>, vector<8x8xf32> -> vector<8x8xf32>
    %cst_11 = arith.constant dense<0xFF800000> : vector<8xf32>
    %38 = vector.multi_reduction <maximumf>, %37, %cst_11 [1] : vector<8x8xf32> to vector<8xf32>
    %39 = vector.shape_cast %38 : vector<8xf32> to vector<8x1xf32>
    %40 = vector.broadcast %39 : vector<8x1xf32> to vector<8x8xf32>
    %41 = arith.subf %37, %40 : vector<8x8xf32>
    %42 = math.exp %41 : vector<8x8xf32>
    %cst_12 = arith.constant dense<0.000000e+00> : vector<8xf32>
    %43 = vector.multi_reduction <add>, %42, %cst_12 [1] : vector<8x8xf32> to vector<8xf32>
    %44 = vector.shape_cast %43 : vector<8xf32> to vector<8x1xf32>
    %45 = arith.truncf %42 : vector<8x8xf32> to vector<8x8xbf16>
    %cst_13 = arith.constant dense<0.000000e+00> : vector<8x8xf32>
    %46 = tpu.matmul %45, %36, %cst_13 {dimension_numbers = #tpu.dot_dimension_numbers<[1], [0], [0], [1], [0, 0, 1, 1], [], []>} : vector<8x8xbf16>, vector<8x8xbf16>, vector<8x8xf32> -> vector<8x8xf32>
    %47 = tpu.reciprocal %44 {approx = true} : vector<8x1xf32> -> vector<8x1xf32>
    %48 = vector.broadcast %47 : vector<8x1xf32> to vector<8x8xf32>
    %49 = arith.mulf %46, %48 : vector<8x8xf32>
    %50 = vector.extract_strided_slice %0 {offsets = [0, 24], sizes = [8, 8], strides = [1, 1]} : vector<8x32xbf16> to vector<8x8xbf16>
    %51 = vector.extract_strided_slice %1 {offsets = [0, 24], sizes = [8, 8], strides = [1, 1]} : vector<8x64xbf16> to vector<8x8xbf16>
    %52 = vector.extract_strided_slice %1 {offsets = [0, 56], sizes = [8, 8], strides = [1, 1]} : vector<8x64xbf16> to vector<8x8xbf16>
    %cst_14 = arith.constant dense<0.000000e+00> : vector<8x8xf32>
    %53 = tpu.matmul %50, %51, %cst_14 {dimension_numbers = #tpu.dot_dimension_numbers<[1], [1], [0], [0], [0, 0, 1, 0], [], []>} : vector<8x8xbf16>, vector<8x8xbf16>, vector<8x8xf32> -> vector<8x8xf32>
    %cst_15 = arith.constant dense<0xFF800000> : vector<8xf32>
    %54 = vector.multi_reduction <maximumf>, %53, %cst_15 [1] : vector<8x8xf32> to vector<8xf32>
    %55 = vector.shape_cast %54 : vector<8xf32> to vector<8x1xf32>
    %56 = vector.broadcast %55 : vector<8x1xf32> to vector<8x8xf32>
    %57 = arith.subf %53, %56 : vector<8x8xf32>
    %58 = math.exp %57 : vector<8x8xf32>
    %cst_16 = arith.constant dense<0.000000e+00> : vector<8xf32>
    %59 = vector.multi_reduction <add>, %58, %cst_16 [1] : vector<8x8xf32> to vector<8xf32>
    %60 = vector.shape_cast %59 : vector<8xf32> to vector<8x1xf32>
    %61 = arith.truncf %58 : vector<8x8xf32> to vector<8x8xbf16>
    %cst_17 = arith.constant dense<0.000000e+00> : vector<8x8xf32>
    %62 = tpu.matmul %61, %52, %cst_17 {dimension_numbers = #tpu.dot_dimension_numbers<[1], [0], [0], [1], [0, 0, 1, 1], [], []>} : vector<8x8xbf16>, vector<8x8xbf16>, vector<8x8xf32> -> vector<8x8xf32>
    %63 = tpu.reciprocal %60 {approx = true} : vector<8x1xf32> -> vector<8x1xf32>
    %64 = vector.broadcast %63 : vector<8x1xf32> to vector<8x8xf32>
    %65 = arith.mulf %62, %64 : vector<8x8xf32>
    %66 = tpu.concatenate %17, %33, %49, %65 in 1 : vector<8x8xf32>, vector<8x8xf32>, vector<8x8xf32>, vector<8x8xf32> -> vector<8x32xf32>
    %67 = arith.truncf %66 : vector<8x32xf32> to vector<8x32xbf16>
    %c0_18 = arith.constant 0 : index
    %c0_19 = arith.constant 0 : index
    %68 = vector.load %arg3[%c0_18, %c0_19] : memref<8x32xbf16, #tpu.memory_space<vmem>>, vector<8x32xbf16>
    tpu.vector_store %arg3[%c0_18, %c0_19], %67 {strides = array<i32>} : memref<8x32xbf16, #tpu.memory_space<vmem>>, vector<8x32xbf16>,
    return
  }
  func.func @transform_0(%arg0: i32) -> (i32, i32) {
    %c0_i32 = arith.constant 0 : i32
    %c0_i32_0 = arith.constant 0 : i32
    return %arg0, %c0_i32 : i32, i32
  }
  func.func @transform_1(%arg0: i32) -> (i32, i32) {
    %c0_i32 = arith.constant 0 : i32
    %c0_i32_0 = arith.constant 0 : i32
    return %arg0, %c0_i32 : i32, i32
  }
  func.func @transform_2(%arg0: i32) -> (i32, i32) {
    %c0_i32 = arith.constant 0 : i32
    %c0_i32_0 = arith.constant 0 : i32
    return %arg0, %c0_i32 : i32, i32
  }
}

module attributes {stable_mosaic.version = 11 : i64} {
  func.func @_matmul_kernel(%arg0: i32, %arg1: i32, %arg2: i32, %arg3: memref<8x32xbf16, #tpu.memory_space<vmem>>, %arg4: memref<32x128xbf16, #tpu.memory_space<vmem>>, %arg5: memref<1x128xf32, #tpu.memory_space<vmem>>, %arg6: memref<8x128xf32, #tpu.memory_space<vmem>>, %arg7: memref<8x128xf32, #tpu.memory_space<vmem>>) attributes {dimension_semantics = [#tpu.dimension_semantics<parallel>, #tpu.dimension_semantics<parallel>, #tpu.dimension_semantics<arbitrary>], iteration_bounds = array<i64: 2, 1, 1>, scalar_prefetch = 0 : i64, scratch_operands = 1 : i64, tpu.core_type = #tpu.core_type<tc>, window_params = [{transform_indices = @transform_0, window_bounds = array<i64: 8, 32>}, {transform_indices = @transform_1, window_bounds = array<i64: 32, 128>}, {transform_indices = @transform_2, window_bounds = array<i64: 1, 128>}, {transform_indices = @transform_3, window_bounds = array<i64: 8, 128>}]} {
    %c0_i32 = arith.constant 0 : i32
    %0 = arith.cmpi eq, %arg2, %c0_i32 : i32
    %1 = arith.extui %0 : i1 to i32
    %c0_i32_0 = arith.constant 0 : i32
    %2 = arith.cmpi ne, %1, %c0_i32_0 : i32
    scf.if %2 {
      %cst_10 = arith.constant 0.000000e+00 : f32
      %12 = vector.broadcast %cst_10 : f32 to vector<8x128xf32>
      %c0_11 = arith.constant 0 : index
      %c0_12 = arith.constant 0 : index
      %13 = vector.load %arg7[%c0_11, %c0_12] : memref<8x128xf32, #tpu.memory_space<vmem>>, vector<8x128xf32>
      tpu.vector_store %arg7[%c0_11, %c0_12], %12 {strides = array<i32>} : memref<8x128xf32, #tpu.memory_space<vmem>>, vector<8x128xf32>,
    } else {
    }
    %c0 = arith.constant 0 : index
    %c0_1 = arith.constant 0 : index
    %3 = vector.load %arg7[%c0, %c0_1] : memref<8x128xf32, #tpu.memory_space<vmem>>, vector<8x128xf32>
    %c0_2 = arith.constant 0 : index
    %c0_3 = arith.constant 0 : index
    %4 = vector.load %arg3[%c0_2, %c0_3] : memref<8x32xbf16, #tpu.memory_space<vmem>>, vector<8x32xbf16>
    %c0_4 = arith.constant 0 : index
    %c0_5 = arith.constant 0 : index
    %5 = vector.load %arg4[%c0_4, %c0_5] : memref<32x128xbf16, #tpu.memory_space<vmem>>, vector<32x128xbf16>
    %cst = arith.constant dense<0.000000e+00> : vector<8x128xf32>
    %6 = tpu.matmul %4, %5, %cst {dimension_numbers = #tpu.dot_dimension_numbers<[1], [0], [0], [1], [0, 0, 1, 1], [], []>} : vector<8x32xbf16>, vector<32x128xbf16>, vector<8x128xf32> -> vector<8x128xf32>
    %7 = arith.addf %3, %6 : vector<8x128xf32>
    %c0_6 = arith.constant 0 : index
    %c0_7 = arith.constant 0 : index
    %8 = vector.load %arg7[%c0_6, %c0_7] : memref<8x128xf32, #tpu.memory_space<vmem>>, vector<8x128xf32>
    tpu.vector_store %arg7[%c0_6, %c0_7], %7 {strides = array<i32>} : memref<8x128xf32, #tpu.memory_space<vmem>>, vector<8x128xf32>,
    %c0_i32_8 = arith.constant 0 : i32
    %9 = arith.cmpi eq, %arg2, %c0_i32_8 : i32
    %10 = arith.extui %9 : i1 to i32
    %c0_i32_9 = arith.constant 0 : i32
    %11 = arith.cmpi ne, %10, %c0_i32_9 : i32
    scf.if %11 {
      %c0_10 = arith.constant 0 : index
      %c0_11 = arith.constant 0 : index
      %12 = vector.load %arg7[%c0_10, %c0_11] : memref<8x128xf32, #tpu.memory_space<vmem>>, vector<8x128xf32>
      %c0_12 = arith.constant 0 : index
      %c0_13 = arith.constant 0 : index
      %13 = vector.load %arg5[%c0_12, %c0_13] : memref<1x128xf32, #tpu.memory_space<vmem>>, vector<1x128xf32>
      %14 = vector.broadcast %13 : vector<1x128xf32> to vector<8x128xf32>
      %15 = arith.addf %12, %14 : vector<8x128xf32>
      %c0_14 = arith.constant 0 : index
      %c0_15 = arith.constant 0 : index
      %16 = vector.load %arg6[%c0_14, %c0_15] : memref<8x128xf32, #tpu.memory_space<vmem>>, vector<8x128xf32>
      tpu.vector_store %arg6[%c0_14, %c0_15], %15 {strides = array<i32>} : memref<8x128xf32, #tpu.memory_space<vmem>>, vector<8x128xf32>,
    } else {
    }
    return
  }
  func.func @transform_0(%arg0: i32, %arg1: i32, %arg2: i32) -> (i32, i32) {
    %c0_i32 = arith.constant 0 : i32
    return %arg0, %arg2 : i32, i32
  }
  func.func @transform_1(%arg0: i32, %arg1: i32, %arg2: i32) -> (i32, i32) {
    %c0_i32 = arith.constant 0 : i32
    return %arg2, %arg1 : i32, i32
  }
  func.func @transform_2(%arg0: i32, %arg1: i32, %arg2: i32) -> (i32, i32) {
    %c0_i32 = arith.constant 0 : i32
    %c0_i32_0 = arith.constant 0 : i32
    return %c0_i32, %arg1 : i32, i32
  }
  func.func @transform_3(%arg0: i32, %arg1: i32, %arg2: i32) -> (i32, i32) {
    %c0_i32 = arith.constant 0 : i32
    return %arg0, %arg1 : i32, i32
  }
}

</mosaic_0001>

<bundles_post_ra>
// kernel: forward.31
= control target key start
LH: loop header
LB: loop body
LE: loop exit
PB: predicated region body
PF: predicated region fallthrough
CT: control target
= control target key end

     0   :  { %s405_s15 = smov 0   ;;  %s431_s0 = inlined_call_operand.vmem [shape: f32[16,8], index: 0, kind: input, shape index: {}]   ;;  %s432_s1 = inlined_call_operand.vmem [shape: bf16[8,32], index: 1, kind: input, shape index: {}]   ;;  %s433_s2 = inlined_call_operand.vmem [shape: f32[1,32], index: 2, kind: input, shape index: {}]   ;;  %s434_s3 = inlined_call_operand.vmem [shape: f32[2,1,32], index: 3, kind: input, shape index: {}]   ;;  %s435_s4 = inlined_call_operand.vmem [shape: bf16[16,32], index: 4, kind: output, shape index: {}]  }
   0x1 LB: > { %s340_s16 = sadd.s32 4294967295, %s376_s15   ;;  %p344_p0 = scmp.ge.s32.totalorder %s376_s15, 1  ;;  %s376_s15 = sphi %s405_s15, %s14_s15  }
   0x2   : > { %p169_p1 = scmp.lt.s32.totalorder %s376_s15, 3 }
   0x4   : > { %p170_p2 = pnand %p344_p0, %p169_p1 }
   0x5   : > { %v210_v0 = vld [vmem:[%s432_s1] sm:$0xf] (!%p170_p2)  ;;  %vm223_vm0 = vcmask (!%p170_p2), 1043456   ;;  %p196_p3 = scmp.lt.s32.totalorder (!%p170_p2), %s340_s16, 1  ;;  %v378_v1 = vmov (!%p170_p2), 0.0   ;;  %vm379_vm1 = vmmov (!%p170_p2), 0  }
   0x6   : > { %173 = sbr.rel (%p170_p2) target bundleno = 240 (0xf0), region = 36  ;;  %354 = vmatprep.subr.bf16.mxu0 (!%p170_p2), %v378_v1  ;;  %v225_v2 = vsel (!%p170_p2), %vm223_vm0, %v210_v0, 0  ;;  %356 = vmatprep.mubr.msk.bf16.mxu0 (!%p170_p2), %vm379_vm1, %v378_v1  ;;  %vm219_vm2 = vcmask (!%p170_p2), 64512   ;;  %v347_v5 = vld [vmem:[%s433_s2] ss:$0 sm:$0xff] (!%p170_p2)  ;;  %vm276_vm3 = vcmask (!%p170_p2), 257024  }
   0x7   : > { %355 = vmatpush3.bf16.msra.mxu0 (!%p170_p2), %v225_v2 }
   0xd   : > { %s437_s16 = smov (!%p196_p3, %s340_s16), 1 }
   0xe   : > { %s345_s19 = sshll.u32 %s437_s16, 3  ;;  %s202_s27 = scalar_lea.vmem %s434_s3, %s437_s16 }
   0xf   : > { %s199_s22 = scalar_lea.vmem %s431_s0, %s345_s19  ;;  %v349_v9 = vld [vmem:[%s202_s27] ss:$0 sm:$0xff]  ;;  %s346_s28 = sshll.u32 %s437_s16, 2 }
  0x10   : > { %v208_v3 = vld [vmem:[%s199_s22] sm:$0xff]  ;;  %s206_s5 = scalar_lea.vmem %s435_s4, %s346_s28 }
  0x11   : > { %v209_v4 = vpack.c.bf16 %v208_v3, %v208_v3 }
  0x13   : > { %357 = vmatmul.mubr.msk.bf16.vlgmr.msra.gmra.mrb[0].mxu0 %vm219_vm2, %v209_v4 }
  0xe6   : > { %v261_v6 = vpop.f32.mrb[0].mxu0 }
  0xe7   : > { %v262_v7 = vadd.f32 %v347_v5, %v261_v6  ;;  %v358_v8 = vpop.f32.mrb[1].mxu0 }
  0xe8   : > { %v264_v10 = vpop.f32.mrb[2].mxu0 }
  0xe9   : > { %v267_v11 = vmul.f32 5.656854, %v262_v7  ;;  %v359_v12 = vpop.f32.mrb[3].mxu0 }
  0xeb   : > { %v274_v13 = vadd.f32 %v349_v9, %v267_v11 }
  0xed   : > { %v275_v14 = vpack.c.bf16 %v274_v13, %v274_v13 }
  0xef   : > { %277 = vst.msk [vmem:[%s206_s5] sm:$0xf] %vm276_vm3, %v275_v14 }
  0xf0 PF: > { %s14_s15 = sadd.s32 1, %s376_s15  }
  0xf1   : > { %p11_p4 = scmp.ge.s32.totalorder %s14_s15, 4  }
  0xf3   :  { %13 = sbr.rel (!%p11_p4) target bundleno = 1 (0x1), region = 69 }

// kernel: forward.32
= control target key start
LH: loop header
LB: loop body
LE: loop exit
PB: predicated region body
PF: predicated region fallthrough
CT: control target
= control target key end

     0   :  { %s546_s12 = smov 0   ;;  %s548_s13 = smov 0   ;;  %s590_s0 = inlined_call_operand.vmem [shape: bf16[16,32], index: 0, kind: input, shape index: {}]   ;;  %s591_s1 = inlined_call_operand.vmem [shape: bf16[32,96], index: 1, kind: input, shape index: {}]   ;;  %s592_s2 = inlined_call_operand.vmem [shape: f32[1,96], index: 2, kind: input, shape index: {}]   ;;  %s593_s3 = inlined_call_operand.vmem [shape: bf16[16,96], index: 3, kind: output, shape index: {}]  }
   0x1   :  { %s550_s14 = smov 0  }
   0x2 LB: > { %s32_s15 = sadd.s32 1, %s518_s13  ;;  %p452_p0 = scmp.ge.s32.totalorder %s522_s14, 1  ;;  %s522_s14 = sphi %s550_s14, %s13_s14   ;;  %s518_s13 = sphi %s548_s13, %s595_s13   ;;  %s514_s12 = sphi %s546_s12, %s594_s12  }
   0x3   : > { %p34_p1 = scmp.ge.s32.totalorder %s32_s15, 2  ;;  %p186_p2 = scmp.lt.s32.totalorder %s522_s14, 3 }
   0x5   : > { %s597_s15 = smov (%p34_p1, %s32_s15), 0  ;;  %p187_p3 = pnand %p452_p0, %p186_p2 }
   0x6   : > { %vm256_vm0 = vcmask (!%p187_p3), 785408   ;;  %v524_v0 = vmov (!%p187_p3), 0.0   ;;  %v498_v1 = vld [vmem:[%s591_s1] sm:$0xff] (!%p187_p3)   ;;  %vm525_vm1 = vmmov (!%p187_p3), 0   ;;  %p225_p4 = scmp.lt.s32.totalorder (!%p187_p3), %s514_s12, 1  ;;  %v499_v2 = vld [vmem:[%s591_s1 + $0x8] sm:$0xff] (!%p187_p3)  }
   0x7   : > { %190 = sbr.rel (%p187_p3) target bundleno = 245 (0xf5), region = 32  ;;  %257 = vst.msk [vmem:[#allocation2] sm:$0xff] (!%p187_p3), %vm256_vm0, %v524_v0  ;;  %464 = vmatprep.subr.bf16.mxu0 (!%p187_p3), %v524_v0  ;;  %468 = vmatprep.mubr.msk.bf16.mxu0 (!%p187_p3), %vm525_vm1, %v524_v0  ;;  %vm276_vm2 = vcmask (!%p187_p3), 261120   ;;  %v458_v10 = vld [vmem:[%s592_s2] ss:$0 sm:$0xff] (!%p187_p3)  ;;  %vm336_vm3 = vcmask (!%p187_p3), 781312  }
   0x8   : > { %465 = vmatpush3.bf16.msra.mxu0 (!%p187_p3), %v498_v1 }
   0x9   : > { %466 = vmatprep.subr.bf16.mxu0 (!%p187_p3), %v524_v0 }
   0xc   : > { %467 = vmatpush3.bf16.msra.mxu0 (!%p187_p3), %v499_v2 }
   0xe   : > { %s599_s12 = smov (!%p225_p4, %s514_s12), 1  ;;  %v258_v4 = vld [vmem:[#allocation2] sm:$0xff] }
   0xf   : > { %s453_s20 = sshll.u32 %s599_s12, 2 }
  0x10   : > { %s231_s23 = scalar_lea.vmem %s590_s0, %s453_s20  ;;  %s250_s28 = scalar_lea.vmem %s593_s3, %s453_s20 }
  0x11   : > { %v259_v3 = vld [vmem:[%s231_s23] sm:$0xf] }
  0x12   : > { %469 = vmatmul.mubr.msk.bf16.vlgmr.msra.gmra.mrb[0].mxu0 %vm276_vm2, %v259_v3 }
  0xe5   : > { %v314_v5 = vpop.f32.mrb[0].mxu0 }
  0xe6   : > { %v320_v6 = vadd.f32 %v314_v5, %v258_v4  ;;  %v470_v7 = vpop.f32.mrb[1].mxu0 }
  0xe7   : > { %v317_v8 = vpop.f32.mrb[2].mxu0 }
  0xe8   : > { %322 = vst.msk [vmem:[#allocation2] sm:$0xff] %vm256_vm0, %v320_v6  ;;  %v471_v9 = vpop.f32.mrb[3].mxu0 }
  0xef   : > { %v326_v11 = vld [vmem:[#allocation2] sm:$0xff] }
  0xf0   : > { %v334_v12 = vadd.f32 %v458_v10, %v326_v11 }
  0xf2   : > { %v335_v13 = vpack.c.bf16 %v334_v12, %v334_v12 }
  0xf4   : > { %337 = vst.msk [vmem:[%s250_s28] sm:$0xf] %vm336_vm3, %v335_v13 }
  0xf5 PF: > { %s13_s14 = sadd.s32 1, %s522_s14   ;;  %s594_s12 = smov %s518_s13 }
  0xf6   : > { %p10_p5 = scmp.ge.s32.totalorder %s13_s14, 4   ;;  %s595_s13 = smov %s597_s15 }
  0xf8   :  { %12 = sbr.rel (!%p10_p5) target bundleno = 2 (0x2), region = 76 }

// kernel: forward.34
= control target key start
LH: loop header
LB: loop body
LE: loop exit
PB: predicated region body
PF: predicated region fallthrough
CT: control target
= control target key end

     0   :  { %s639_s21 = smov 0   ;;  %s641_s22 = smov 0   ;;  %s700_s0 = inlined_call_operand.vmem [shape: bf16[16,32], index: 0, kind: input, shape index: {}]   ;;  %s701_s1 = inlined_call_operand.vmem [shape: bf16[32,32], index: 1, kind: input, shape index: {}]   ;;  %s702_s2 = inlined_call_operand.vmem [shape: f32[1,32], index: 2, kind: input, shape index: {}]   ;;  %s703_s3 = inlined_call_operand.vmem [shape: bf16[16,32], index: 3, kind: input, shape index: {}]   ;;  %s704_s4 = inlined_call_operand.vmem [shape: f32[1,32], index: 4, kind: input, shape index: {}]   ;;  %s705_s5 = inlined_call_operand.vmem [shape: f32[1,32], index: 5, kind: input, shape index: {}]   ;;  %s706_s6 = inlined_call_operand.vmem [shape: bf16[16,32], index: 6, kind: output, shape index: {}]  }
   0x1   :  { %s643_s23 = smov 0  }
   0x2 LB: > { %s28_s24 = sadd.s32 1, %s596_s22  ;;  %p525_p0 = scmp.ge.s32.totalorder %s600_s23, 1  ;;  %s600_s23 = sphi %s643_s23, %s16_s23   ;;  %s596_s22 = sphi %s641_s22, %s708_s22   ;;  %s592_s21 = sphi %s639_s21, %s707_s21  }
   0x3   : > { %p30_p1 = scmp.ge.s32.totalorder %s28_s24, 2  ;;  %p248_p2 = scmp.lt.s32.totalorder %s600_s23, 3 }
   0x5   : > { %s710_s24 = smov (%p30_p1, %s28_s24), 0  ;;  %p249_p3 = pnand %p525_p0, %p248_p2 }
   0x6   : > { %v574_v0 = vld [vmem:[%s701_s1] sm:$0xff] (!%p249_p3)   ;;  %v602_v1 = vmov (!%p249_p3), 0.0   ;;  %v575_v2 = vld [vmem:[%s701_s1 + $0x8] sm:$0xff] (!%p249_p3)   ;;  %vm603_vm0 = vmmov (!%p249_p3), 0   ;;  %p288_p4 = scmp.lt.s32.totalorder (!%p249_p3), %s592_s21, 1  ;;  %vm314_vm1 = vcmask (!%p249_p3), 261120  }
   0x7   : > { %252 = sbr.rel (%p249_p3) target bundleno = 560 (0x230), region = 44  ;;  %540 = vmatprep.subr.bf16.mxu0 (!%p249_p3), %v602_v1  ;;  %544 = vmatprep.mubr.msk.bf16.mxu0 (!%p249_p3), %vm603_vm0, %v602_v1  ;;  %315 = vst.msk [vmem:[#allocation2] sm:$0xff] (!%p249_p3), %vm314_vm1, %v602_v1  ;;  %v532_v11 = vld [vmem:[%s702_s2] ss:$0 sm:$0xff] (!%p249_p3)  ;;  %vm426_vm2 = vcmask (!%p249_p3), 257024  }
   0x8   : > { %541 = vmatpush3.bf16.msra.mxu0 (!%p249_p3), %v574_v0  ;;  %v533_v26 = vld [vmem:[%s704_s4] ss:$0 sm:$0xff] (!%p249_p3) }
   0x9   : > { %542 = vmatprep.subr.bf16.mxu0 (!%p249_p3), %v602_v1  ;;  %v534_v28 = vld [vmem:[%s705_s5] ss:$0 sm:$0xff] (!%p249_p3) }
   0xc   : > { %543 = vmatpush3.bf16.msra.mxu0 (!%p249_p3), %v575_v2 }
   0xe   : > { %s712_s21 = smov (!%p288_p4, %s592_s21), 1  ;;  %v316_v4 = vld [vmem:[#allocation2] sm:$0xff] }
   0xf   : > { %s664_s29 = sshll.u32 %s712_s21, 2 }
  0x10   : > { %s294_s8 = scalar_lea.vmem %s700_s0, %s664_s29  ;;  %s304_s11 = scalar_lea.vmem %s703_s3, %s664_s29 }
  0x11   : > { %v317_v3 = vld [vmem:[%s294_s8] sm:$0xf]  ;;  %s308_s20 = scalar_lea.vmem %s706_s6, %s664_s29 }
  0x12   : > { %545 = vmatmul.mubr.msk.bf16.vlgmr.msra.gmra.mrb[0].mxu0 %vm314_vm1, %v317_v3  ;;  %v392_v10 = vld [vmem:[%s304_s11] sm:$0xf] }
  0x13   : > { %v393_v12 = vunpack.c.l.bf16 %v392_v10 }
  0xe5   : > { %v372_v5 = vpop.f32.mrb[0].mxu0 }
  0xe6   : > { %v378_v6 = vadd.f32 %v372_v5, %v316_v4  ;;  %v546_v7 = vpop.f32.mrb[1].mxu0 }
  0xe7   : > { %v375_v8 = vpop.f32.mrb[2].mxu0 }
  0xe8   : > { %379 = vst.msk [vmem:[#allocation2] sm:$0xff] %vm314_vm1, %v378_v6  ;;  %v547_v9 = vpop.f32.mrb[3].mxu0 }
  0xef   : > { %v383_v13 = vld [vmem:[#allocation2] sm:$0xff] }
  0xf0   : > { %v391_v14 = vadd.f32 %v532_v11, %v383_v13 }
  0xf2   : > { %v394_v15 = vadd.f32 %v393_v12, %v391_v14 }
  0xf4   : > { %v395_v16 = vsel %vm314_vm1, %v394_v15, 0.0 }
  0xf5   : > { %396 = vadd.xlane.f32.xlu0 %v395_v16 }
 0x182   : > { %v397_v17 = vpop.xlane.xlu0 %396 }
 0x183   : > { %v399_v18 = vmul.f32 0.03125, %v397_v17 }
 0x185   : > { %v400_v19 = vsub.f32 %v394_v15, %v399_v18 }
 0x187   : > { %v401_v20 = vmul.f32 %v400_v19, %v400_v19 }
 0x189   : > { %v402_v21 = vsel %vm314_vm1, %v401_v20, 0.0 }
 0x18a   : > { %403 = vadd.xlane.f32.xlu0 %v402_v21 }
 0x217   : > { %v404_v22 = vpop.xlane.xlu0 %403 }
 0x218   : > { %v405_v23 = vmul.f32 0.03125, %v404_v22 }
 0x21a   : > { %v406_v24 = vadd.f32 1e-05, %v405_v23 }
 0x21c   : > { %576 = vrsqrt.f32 %v406_v24 }
 0x226   : > { %v577_v25 = vpop.eup %576 }
 0x227   : > { %v408_v27 = vmul.f32 %v577_v25, %v400_v19 }
 0x229   : > { %v416_v29 = vmul.f32 %v533_v26, %v408_v27 }
 0x22b   : > { %v424_v30 = vadd.f32 %v534_v28, %v416_v29 }
 0x22d   : > { %v425_v31 = vpack.c.bf16 %v424_v30, %v424_v30 }
 0x22f   : > { %427 = vst.msk [vmem:[%s308_s20] sm:$0xf] %vm426_vm2, %v425_v31 }
 0x230 PF: > { %s16_s23 = sadd.s32 1, %s600_s23   ;;  %s707_s21 = smov %s596_s22 }
 0x231   : > { %p13_p5 = scmp.ge.s32.totalorder %s16_s23, 4   ;;  %s708_s22 = smov %s710_s24 }
 0x233   :  { %15 = sbr.rel (!%p13_p5) target bundleno = 2 (0x2), region = 88 }

// kernel: forward.33
= control target key start
LH: loop header
LB: loop body
LE: loop exit
PB: predicated region body
PF: predicated region fallthrough
CT: control target
= control target key end

     0   :  { %s787_s6 = smov 0   ;;  %s881_s0 = inlined_call_operand.vmem [shape: bf16[16,96], index: 0, kind: input, shape index: {}]   ;;  %s882_s1 = inlined_call_operand.vmem [shape: bf16[16,32], index: 1, kind: output, shape index: {}]  }
   0x1 LB: > { %s630_s7 = sadd.s32 4294967295, %s759_s6   ;;  %p634_p0 = scmp.ge.s32.totalorder %s759_s6, 1  ;;  %s759_s6 = sphi %s787_s6, %s11_s6  }
   0x2   : > { %p86_p1 = scmp.lt.s32.totalorder %s759_s6, 3 }
   0x4   : > { %p87_p2 = pnand %p634_p0, %p86_p1 }
   0x5   : > { %p104_p3 = scmp.lt.s32.totalorder (!%p87_p2), %s630_s7, 1  ;;  %v761_v0 = vmov (!%p87_p2), 0.0   ;;  %vm762_vm0 = vmmov (!%p87_p2), 0   ;;  %s763_s12 = smov (!%p87_p2), 96   ;;  %vm119_vm1 = vcmask (!%p87_p2), 64512   ;;  %vm181_vm2 = vcmask (!%p87_p2), 1043456  }
   0x6   : > { %90 = sbr.rel (%p87_p2) target bundleno = 1243 (0x4db), region = 24  ;;  %664 = vmatprep.subr.bf16.mxu0 (!%p87_p2), %v761_v0  ;;  %666 = vmatprep.mubr.msk.bf16.mxu0 (!%p87_p2), %vm762_vm0, %v761_v0  ;;  %s764_s13 = smov (!%p87_p2), 64   ;;  %vm570_vm3 = vcmask (!%p87_p2), 130048   ;;  %vm572_vm4 = vcmask (!%p87_p2), 195584   ;;  %vm575_vm5 = vcmask (!%p87_p2), 257024  }
   0x7   : > { %670 = vmatprep.subr.bf16.mxu1 (!%p87_p2), %v761_v0  ;;  %672 = vmatprep.mubr.msk.bf16.mxu1 (!%p87_p2), %vm762_vm0, %v761_v0  ;;  %s765_s14 = smov (!%p87_p2), 88   ;;  %s766_s15 = smov (!%p87_p2), 120  }
   0x8   : > { %s767_s16 = smov (!%p87_p2), 80   ;;  %s768_s17 = smov (!%p87_p2), 112  }
   0x9   : > { %s769_s18 = smov (!%p87_p2), 72   ;;  %s770_s19 = smov (!%p87_p2), 104  }
   0xa   : > { %s771_s20 = smov (!%p87_p2), 56   ;;  %s772_s21 = smov (!%p87_p2), 48  }
   0xb   : > { %s773_s22 = smov (!%p87_p2), 40   ;;  %s774_s23 = smov (!%p87_p2), 8  }
   0xc   : > { %s775_s24 = smov (!%p87_p2), 16   ;;  %s776_s25 = smov (!%p87_p2), 24  }
   0xd   : > { %s884_s7 = smov (!%p104_p3, %s630_s7), 1 }
   0xe   : > { %s635_s8 = sshll.u32 %s884_s7, 2 }
   0xf   : > { %s107_s11 = scalar_lea.vmem %s881_s0, %s635_s8  ;;  %s111_s28 = scalar_lea.vmem %s882_s1, %s635_s8 }
  0x10   : > { %v113_v1 = vld [vmem:[%s107_s11] sm:$0xf] }
  0x11   : > { %v809_v2 = vcombine.low %v113_v1, %v113_v1 }
  0x13   : > { %117 = vrot.lane.b32.xlu0 %v809_v2, %s763_s12  ;;  %176 = vrot.lane.b32.xlu1 %v809_v2, %s764_s13 }
  0x17   : > { %229 = vrot.lane.b32.xlu1 %v809_v2, %s765_s14 }
  0x1b   : > { %227 = vrot.lane.b32.xlu1 %v809_v2, %s766_s15 }
  0x1f   : > { %339 = vrot.lane.b32.xlu1 %v809_v2, %s767_s16 }
  0x23   : > { %337 = vrot.lane.b32.xlu1 %v809_v2, %s768_s17 }
  0x27   : > { %449 = vrot.lane.b32.xlu1 %v809_v2, %s769_s18 }
  0x2b   : > { %447 = vrot.lane.b32.xlu1 %v809_v2, %s770_s19 }
  0x85   : > { %v118_v3 = vpop.permute.xlu0 %117  ;;  %v177_v10 = vpop.permute.xlu1 %176 }
  0x86   : > { %v124_v4 = vsel %vm119_vm1, %v118_v3, 0  ;;  %v183_v11 = vsel %vm181_vm2, %v177_v10, 0 }
  0x87   : > { %665 = vmatpush3.bf16.xpose.msra.mxu0 %v124_v4  ;;  %671 = vmatpush3.bf16.msra.mxu1 %v183_v11 }
  0x88   : > { %682 = vmatprep.subr.bf16.mxu0 %v761_v0  ;;  %676 = vmatprep.subr.bf16.mxu1 %v761_v0 }
  0x89   : > { %v230_v15 = vpop.permute.xlu1 %229 }
  0x8a   : > { %v235_v18 = vsel %vm119_vm1, %v230_v15, 0 }
  0x8d   : > { %v228_v16 = vpop.permute.xlu1 %227 }
  0x8e   : > { %667 = vmatmul.mubr.msk.bf16.vlgmr.msra.gmra.mrb[0].mxu0 %vm119_vm1, %v113_v1 }
  0x8f   : > { %684 = vmatprep.mubr.msk.bf16.mxu0 %vm762_vm0, %v761_v0 }
  0x91   : > { %v340_v20 = vpop.permute.xlu1 %339 }
  0x92   : > { %v345_v22 = vsel %vm119_vm1, %v340_v20, 0 }
  0x95   : > { %v338_v21 = vpop.permute.xlu1 %337 }
  0x99   : > { %v450_v23 = vpop.permute.xlu1 %449 }
  0x9a   : > { %v455_v24 = vsel %vm119_vm1, %v450_v23, 0 }
  0x9d   : > { %v448_v25 = vpop.permute.xlu1 %447 }
 0x161   : > { %v160_v5 = vpop.f32.mrb[0].mxu0 }
 0x162   : > { %v668_v6 = vpop.f32.mrb[1].mxu0  ;;  %v166_v7 = vsel %vm119_vm1, %v160_v5, -inf }
 0x163   : > { %167 = vmax.xlane.f32.xlu0 %v166_v7  ;;  %v163_v8 = vpop.f32.mrb[2].mxu0 }
 0x164   : > { %v669_v9 = vpop.f32.mrb[3].mxu0 }
 0x179   : > { %287 = vrot.lane.b32.xlu0 %v809_v2, %s771_s20 }
 0x1f0   : > { %v168_v12 = vpop.xlane.xlu0 %167 }
 0x1f1   : > { %v169_v13 = vsub.f32 %v160_v5, %v168_v12 }
 0x1f3   : > { %v170_v14 = vmul.f32 1.442695, %v169_v13 }
 0x1f4   : > { %v288_v26 = vpop.permute.xlu0 %287 }
 0x1f5   : > { %737 = vpow2.f32 %v170_v14  ;;  %v293_v27 = vsel %vm181_vm2, %v288_v26, 0 }
 0x1f6   : > { %683 = vmatpush3.bf16.msra.mxu0 %v293_v27 }
 0x1f7   : > { %694 = vmatprep.subr.bf16.mxu0 %v761_v0 }
 0x1ff   : > { %v828_v17 = vpop.eup %737 }
 0x200   : > { %v175_v19 = vpack.c.bf16 %v828_v17, %v828_v17  ;;  %v172_v6 = vsel %vm119_vm1, %v828_v17, 0.0 }
 0x202   : > { %673 = vmatmul.mubr.msk.bf16.vlgmr.msra.gmra.mrb[0].mxu1 %vm119_vm1, %v175_v19 }
 0x203   : > { %677 = vmatpush3.bf16.xpose.msra.mxu1 %v235_v18  ;;  %678 = vmatprep.mubr.msk.bf16.mxu1 %vm762_vm0, %v761_v0 }
 0x204   : > { %688 = vmatprep.subr.bf16.mxu1 %v761_v0 }
 0x20a   : > { %679 = vmatmul.mubr.msk.bf16.vlgmr.msra.gmra.mrb[4].mxu1 %vm119_vm1, %v228_v16 }
 0x20b   : > { %689 = vmatpush3.bf16.xpose.msra.mxu1 %v345_v22  ;;  %690 = vmatprep.mubr.msk.bf16.mxu1 %vm762_vm0, %v761_v0 }
 0x20c   : > { %700 = vmatprep.subr.bf16.mxu1 %v761_v0 }
 0x212   : > { %691 = vmatmul.mubr.msk.bf16.vlgmr.msra.gmra.mrb[8].mxu1 %vm119_vm1, %v338_v21 }
 0x213   : > { %701 = vmatpush3.bf16.xpose.msra.mxu1 %v455_v24  ;;  %702 = vmatprep.mubr.msk.bf16.mxu1 %vm762_vm0, %v761_v0 }
 0x21a   : > { %703 = vmatmul.mubr.msk.bf16.vlgmr.msra.gmra.mrb[12].mxu1 %vm119_vm1, %v448_v25 }
 0x2d5   : > { %v849_v28 = vpop.f32.mrb[0].mxu1 }
 0x2d6   : > { %v674_v29 = vpop.f32.mrb[1].mxu1 }
 0x2d7   : > { %v222_v30 = vpop.f32.mrb[2].mxu1 }
 0x2d8   : > { %v675_v31 = vpop.f32.mrb[3].mxu1 }
 0x2dd   : > { %v271_v32 = vpop.f32.mrb[4].mxu1 }
 0x2de   : > { %v680_v33 = vpop.f32.mrb[5].mxu1  ;;  %v277_v34 = vsel %vm119_vm1, %v271_v32, -inf }
 0x2df   : > { %278 = vmax.xlane.f32.xlu1 %v277_v34  ;;  %v274_v35 = vpop.f32.mrb[6].mxu1 }
 0x2e0   : > { %v681_v36 = vpop.f32.mrb[7].mxu1 }
 0x2e5   : > { %v381_v37 = vpop.f32.mrb[8].mxu1 }
 0x2e6   : > { %v692_v38 = vpop.f32.mrb[9].mxu1  ;;  %v387_v39 = vsel %vm119_vm1, %v381_v37, -inf }
 0x2e7   : > { %388 = vmax.xlane.f32.xlu0 %v387_v39  ;;  %v384_v40 = vpop.f32.mrb[10].mxu1 }
 0x2e8   : > { %v693_v41 = vpop.f32.mrb[11].mxu1 }
 0x2ed   : > { %v491_v42 = vpop.f32.mrb[12].mxu1 }
 0x2ee   : > { %v704_v43 = vpop.f32.mrb[13].mxu1  ;;  %v497_v44 = vsel %vm119_vm1, %v491_v42, -inf }
 0x2ef   : > { %498 = vmax.xlane.f32.xlu0 %v497_v44  ;;  %v494_v45 = vpop.f32.mrb[14].mxu1 }
 0x2f0   : > { %v705_v46 = vpop.f32.mrb[15].mxu1  ;;  %397 = vrot.lane.b32.xlu1 %v809_v2, %s772_s21 }
 0x305   : > { %507 = vrot.lane.b32.xlu0 %v809_v2, %s773_s22 }
 0x36c   : > { %v279_v47 = vpop.xlane.xlu1 %278 }
 0x36d   : > { %v280_v48 = vsub.f32 %v271_v32, %v279_v47 }
 0x36f   : > { %v281_v49 = vmul.f32 1.442695, %v280_v48 }
 0x370   : > { %v398_v53 = vpop.permute.xlu1 %397 }
 0x371   : > { %739 = vpow2.f32 %v281_v49  ;;  %v403_v55 = vsel %vm181_vm2, %v398_v53, 0 }
 0x374   : > { %v389_v50 = vpop.xlane.xlu0 %388 }
 0x375   : > { %v390_v51 = vsub.f32 %v381_v37, %v389_v50 }
 0x377   : > { %v391_v52 = vmul.f32 1.442695, %v390_v51 }
 0x379   : > { %741 = vpow2.f32 %v391_v52 }
 0x37b   : > { %v740_v54 = vpop.eup %739 }
 0x37c   : > { %v499_v56 = vpop.xlane.xlu0 %498  ;;  %v283_v57 = vsel %vm119_vm1, %v740_v54, 0.0  ;;  %v286_v58 = vpack.c.bf16 %v740_v54, %v740_v54 }
 0x37d   : > { %v500_v59 = vsub.f32 %v491_v42, %v499_v56  ;;  %284 = vadd.xlane.f32.xlu0 %v283_v57 }
 0x37e   : > { %685 = vmatmul.mubr.msk.bf16.vlgmr.msra.gmra.mrb[4].mxu0 %vm119_vm1, %v286_v58 }
 0x37f   : > { %v501_v60 = vmul.f32 1.442695, %v500_v59  ;;  %695 = vmatpush3.bf16.msra.mxu0 %v403_v55  ;;  %696 = vmatprep.mubr.msk.bf16.mxu0 %vm762_vm0, %v761_v0 }
 0x380   : > { %706 = vmatprep.subr.bf16.mxu0 %v761_v0  ;;  %v508_v61 = vpop.permute.xlu0 %507 }
 0x381   : > { %743 = vpow2.f32 %v501_v60  ;;  %v513_v63 = vsel %vm181_vm2, %v508_v61, 0 }
 0x383   : > { %v742_v62 = vpop.eup %741 }
 0x384   : > { %v393_v1 = vsel %vm119_vm1, %v742_v62, 0.0  ;;  %v396_v2 = vpack.c.bf16 %v742_v62, %v742_v62 }
 0x385   : > { %394 = vadd.xlane.f32.xlu1 %v393_v1 }
 0x386   : > { %697 = vmatmul.mubr.msk.bf16.vlgmr.msra.gmra.mrb[8].mxu0 %vm119_vm1, %v396_v2 }
 0x387   : > { %707 = vmatpush3.bf16.msra.mxu0 %v513_v63  ;;  %708 = vmatprep.mubr.msk.bf16.mxu0 %vm762_vm0, %v761_v0 }
 0x38b   : > { %v744_v3 = vpop.eup %743 }
 0x38c   : > { %v503_v4 = vsel %vm119_vm1, %v744_v3, 0.0  ;;  %v506_v5 = vpack.c.bf16 %v744_v3, %v744_v3 }
 0x38d   : > { %504 = vadd.xlane.f32.xlu0 %v503_v4 }
 0x38e   : > { %709 = vmatmul.mubr.msk.bf16.vlgmr.msra.gmra.mrb[12].mxu0 %vm119_vm1, %v506_v5 }
 0x391   : > { %173 = vadd.xlane.f32.xlu0 %v172_v6 }
 0x40a   : > { %v285_v7 = vpop.xlane.xlu0 %284 }
 0x40b   : > { %745 = vrcp.f32 %v285_v7 }
 0x412   : > { %v395_v8 = vpop.xlane.xlu1 %394 }
 0x413   : > { %747 = vrcp.f32 %v395_v8 }
 0x415   : > { %v746_v9 = vpop.eup %745 }
 0x41a   : > { %v505_v13 = vpop.xlane.xlu0 %504 }
 0x41b   : > { %749 = vrcp.f32 %v505_v13 }
 0x41d   : > { %v748_v15 = vpop.eup %747 }
 0x41e   : > { %v174_v27 = vpop.xlane.xlu0 %173 }
 0x41f   : > { %751 = vrcp.f32 %v174_v27 }
 0x425   : > { %v750_v21 = vpop.eup %749 }
 0x429   : > { %v752_v29 = vpop.eup %751 }
 0x42a   : > { %v226_v31 = vmul.f32 %v752_v29, %v849_v28 }
 0x451   : > { %v329_v10 = vpop.f32.mrb[4].mxu0 }
 0x452   : > { %v336_v11 = vmul.f32 %v746_v9, %v329_v10  ;;  %v686_v12 = vpop.f32.mrb[5].mxu0 }
 0x453   : > { %v332_v0 = vpop.f32.mrb[6].mxu0 }
 0x454   : > { %558 = vrot.lane.b32.xlu0 %v336_v11, %s774_s23  ;;  %v687_v14 = vpop.f32.mrb[7].mxu0 }
 0x459   : > { %v439_v16 = vpop.f32.mrb[8].mxu0 }
 0x45a   : > { %v446_v18 = vmul.f32 %v748_v15, %v439_v16  ;;  %v698_v19 = vpop.f32.mrb[9].mxu0 }
 0x45b   : > { %v442_v17 = vpop.f32.mrb[10].mxu0 }
 0x45c   : > { %562 = vrot.lane.b32.xlu1 %v446_v18, %s775_s24  ;;  %v699_v20 = vpop.f32.mrb[11].mxu0 }
 0x461   : > { %v549_v22 = vpop.f32.mrb[12].mxu0 }
 0x462   : > { %v556_v23 = vmul.f32 %v750_v21, %v549_v22  ;;  %v710_v24 = vpop.f32.mrb[13].mxu0 }
 0x463   : > { %v552_v25 = vpop.f32.mrb[14].mxu0 }
 0x464   : > { %566 = vrot.lane.b32.xlu0 %v556_v23, %s776_s25  ;;  %v711_v26 = vpop.f32.mrb[15].mxu0 }
 0x4c6   : > { %v559_v30 = vpop.permute.xlu0 %558 }
 0x4c7   : > { %v569_v33 = vsel %vm119_vm1, %v226_v31, %v559_v30 }
 0x4ce   : > { %v563_v32 = vpop.permute.xlu1 %562 }
 0x4cf   : > { %v571_v34 = vsel %vm570_vm3, %v569_v33, %v563_v32 }
 0x4d6   : > { %v567_v35 = vpop.permute.xlu0 %566 }
 0x4d7   : > { %v573_v36 = vsel %vm572_vm4, %v571_v34, %v567_v35 }
 0x4d8   : > { %v574_v37 = vpack.c.bf16 %v573_v36, %v573_v36 }
 0x4da   : > { %576 = vst.msk [vmem:[%s111_s28] sm:$0xf] %vm575_vm5, %v574_v37 }
 0x4db PF: > { %s11_s6 = sadd.s32 1, %s759_s6  }
 0x4dc   : > { %p8_p4 = scmp.ge.s32.totalorder %s11_s6, 4  }
 0x4de   :  { %10 = sbr.rel (!%p8_p4) target bundleno = 1 (0x1), region = 54 }

// kernel: forward.35
= control target key start
LH: loop header
LB: loop body
LE: loop exit
PB: predicated region body
PF: predicated region fallthrough
CT: control target
= control target key end

     0   :  { %s547_s12 = smov 0   ;;  %s549_s13 = smov 0   ;;  %s591_s0 = inlined_call_operand.vmem [shape: bf16[16,32], index: 0, kind: input, shape index: {}]   ;;  %s592_s1 = inlined_call_operand.vmem [shape: bf16[32,64], index: 1, kind: input, shape index: {}]   ;;  %s593_s2 = inlined_call_operand.vmem [shape: f32[1,64], index: 2, kind: input, shape index: {}]   ;;  %s594_s3 = inlined_call_operand.vmem [shape: bf16[16,64], index: 3, kind: output, shape index: {}]  }
   0x1   :  { %s551_s14 = smov 0  }
   0x2 LB: > { %s32_s15 = sadd.s32 1, %s519_s13  ;;  %p453_p0 = scmp.ge.s32.totalorder %s523_s14, 1  ;;  %s523_s14 = sphi %s551_s14, %s13_s14   ;;  %s519_s13 = sphi %s549_s13, %s596_s13   ;;  %s515_s12 = sphi %s547_s12, %s595_s12  }
   0x3   : > { %p34_p1 = scmp.ge.s32.totalorder %s32_s15, 2  ;;  %p186_p2 = scmp.lt.s32.totalorder %s523_s14, 3 }
   0x5   : > { %s598_s15 = smov (%p34_p1, %s32_s15), 0  ;;  %p187_p3 = pnand %p453_p0, %p186_p2 }
   0x6   : > { %vm256_vm0 = vcmask (!%p187_p3), 523264   ;;  %v525_v0 = vmov (!%p187_p3), 0.0   ;;  %v499_v1 = vld [vmem:[%s592_s1] sm:$0xff] (!%p187_p3)   ;;  %vm526_vm1 = vmmov (!%p187_p3), 0   ;;  %p225_p4 = scmp.lt.s32.totalorder (!%p187_p3), %s515_s12, 1  ;;  %v500_v2 = vld [vmem:[%s592_s1 + $0x8] sm:$0xff] (!%p187_p3)  }
   0x7   : > { %190 = sbr.rel (%p187_p3) target bundleno = 247 (0xf7), region = 32  ;;  %257 = vst.msk [vmem:[#allocation2] sm:$0xff] (!%p187_p3), %vm256_vm0, %v525_v0  ;;  %465 = vmatprep.subr.bf16.mxu0 (!%p187_p3), %v525_v0  ;;  %469 = vmatprep.mubr.msk.bf16.mxu0 (!%p187_p3), %vm526_vm1, %v525_v0  ;;  %vm276_vm2 = vcmask (!%p187_p3), 261120   ;;  %v459_v10 = vld [vmem:[%s593_s2] ss:$0 sm:$0xff] (!%p187_p3)  ;;  %vm337_vm3 = vcmask (!%p187_p3), 519168  }
   0x8   : > { %466 = vmatpush3.bf16.msra.mxu0 (!%p187_p3), %v499_v1 }
   0x9   : > { %467 = vmatprep.subr.bf16.mxu0 (!%p187_p3), %v525_v0 }
   0xc   : > { %468 = vmatpush3.bf16.msra.mxu0 (!%p187_p3), %v500_v2 }
   0xe   : > { %s600_s12 = smov (!%p225_p4, %s515_s12), 1  ;;  %v258_v4 = vld [vmem:[#allocation2] sm:$0xff] }
   0xf   : > { %s454_s20 = sshll.u32 %s600_s12, 2 }
  0x10   : > { %s231_s23 = scalar_lea.vmem %s591_s0, %s454_s20  ;;  %s250_s28 = scalar_lea.vmem %s594_s3, %s454_s20 }
  0x11   : > { %v259_v3 = vld [vmem:[%s231_s23] sm:$0xf] }
  0x12   : > { %470 = vmatmul.mubr.msk.bf16.vlgmr.msra.gmra.mrb[0].mxu0 %vm276_vm2, %v259_v3 }
  0xe5   : > { %v314_v5 = vpop.f32.mrb[0].mxu0 }
  0xe6   : > { %v320_v6 = vadd.f32 %v314_v5, %v258_v4  ;;  %v471_v7 = vpop.f32.mrb[1].mxu0 }
  0xe7   : > { %v317_v8 = vpop.f32.mrb[2].mxu0 }
  0xe8   : > { %322 = vst.msk [vmem:[#allocation2] sm:$0xff] %vm256_vm0, %v320_v6  ;;  %v472_v9 = vpop.f32.mrb[3].mxu0 }
  0xef   : > { %v326_v11 = vld [vmem:[#allocation2] sm:$0xff] }
  0xf0   : > { %v334_v12 = vadd.f32 %v459_v10, %v326_v11 }
  0xf2   : > { %v335_v13 = vmax.f32 %v334_v12, 0.0 }
  0xf4   : > { %v336_v14 = vpack.c.bf16 %v335_v13, %v335_v13 }
  0xf6   : > { %338 = vst.msk [vmem:[%s250_s28] sm:$0xf] %vm337_vm3, %v336_v14 }
  0xf7 PF: > { %s13_s14 = sadd.s32 1, %s523_s14   ;;  %s595_s12 = smov %s519_s13 }
  0xf8   : > { %p10_p5 = scmp.ge.s32.totalorder %s13_s14, 4   ;;  %s596_s13 = smov %s598_s15 }
  0xfa   :  { %12 = sbr.rel (!%p10_p5) target bundleno = 2 (0x2), region = 76 }

// kernel: forward.47
= control target key start
LH: loop header
LB: loop body
LE: loop exit
PB: predicated region body
PF: predicated region fallthrough
CT: control target
= control target key end

     0   :  { %s546_s12 = smov 0   ;;  %s548_s13 = smov 0   ;;  %s590_s0 = inlined_call_operand.vmem [shape: bf16[16,32], index: 0, kind: input, shape index: {}]   ;;  %s591_s1 = inlined_call_operand.vmem [shape: bf16[32,64], index: 1, kind: input, shape index: {}]   ;;  %s592_s2 = inlined_call_operand.vmem [shape: f32[1,64], index: 2, kind: input, shape index: {}]   ;;  %s593_s3 = inlined_call_operand.vmem [shape: bf16[16,64], index: 3, kind: output, shape index: {}]  }
   0x1   :  { %s550_s14 = smov 0  }
   0x2 LB: > { %s32_s15 = sadd.s32 1, %s518_s13  ;;  %p452_p0 = scmp.ge.s32.totalorder %s522_s14, 1  ;;  %s522_s14 = sphi %s550_s14, %s13_s14   ;;  %s518_s13 = sphi %s548_s13, %s595_s13   ;;  %s514_s12 = sphi %s546_s12, %s594_s12  }
   0x3   : > { %p34_p1 = scmp.ge.s32.totalorder %s32_s15, 2  ;;  %p186_p2 = scmp.lt.s32.totalorder %s522_s14, 3 }
   0x5   : > { %s597_s15 = smov (%p34_p1, %s32_s15), 0  ;;  %p187_p3 = pnand %p452_p0, %p186_p2 }
   0x6   : > { %vm256_vm0 = vcmask (!%p187_p3), 523264   ;;  %v524_v0 = vmov (!%p187_p3), 0.0   ;;  %v498_v1 = vld [vmem:[%s591_s1] sm:$0xff] (!%p187_p3)   ;;  %vm525_vm1 = vmmov (!%p187_p3), 0   ;;  %p225_p4 = scmp.lt.s32.totalorder (!%p187_p3), %s514_s12, 1  ;;  %v499_v2 = vld [vmem:[%s591_s1 + $0x8] sm:$0xff] (!%p187_p3)  }
   0x7   : > { %190 = sbr.rel (%p187_p3) target bundleno = 245 (0xf5), region = 32  ;;  %257 = vst.msk [vmem:[#allocation2] sm:$0xff] (!%p187_p3), %vm256_vm0, %v524_v0  ;;  %464 = vmatprep.subr.bf16.mxu0 (!%p187_p3), %v524_v0  ;;  %468 = vmatprep.mubr.msk.bf16.mxu0 (!%p187_p3), %vm525_vm1, %v524_v0  ;;  %vm276_vm2 = vcmask (!%p187_p3), 261120   ;;  %v458_v10 = vld [vmem:[%s592_s2] ss:$0 sm:$0xff] (!%p187_p3)  ;;  %vm336_vm3 = vcmask (!%p187_p3), 519168  }
   0x8   : > { %465 = vmatpush3.bf16.msra.mxu0 (!%p187_p3), %v498_v1 }
   0x9   : > { %466 = vmatprep.subr.bf16.mxu0 (!%p187_p3), %v524_v0 }
   0xc   : > { %467 = vmatpush3.bf16.msra.mxu0 (!%p187_p3), %v499_v2 }
   0xe   : > { %s599_s12 = smov (!%p225_p4, %s514_s12), 1  ;;  %v258_v4 = vld [vmem:[#allocation2] sm:$0xff] }
   0xf   : > { %s453_s20 = sshll.u32 %s599_s12, 2 }
  0x10   : > { %s231_s23 = scalar_lea.vmem %s590_s0, %s453_s20  ;;  %s250_s28 = scalar_lea.vmem %s593_s3, %s453_s20 }
  0x11   : > { %v259_v3 = vld [vmem:[%s231_s23] sm:$0xf] }
  0x12   : > { %469 = vmatmul.mubr.msk.bf16.vlgmr.msra.gmra.mrb[0].mxu0 %vm276_vm2, %v259_v3 }
  0xe5   : > { %v314_v5 = vpop.f32.mrb[0].mxu0 }
  0xe6   : > { %v320_v6 = vadd.f32 %v314_v5, %v258_v4  ;;  %v470_v7 = vpop.f32.mrb[1].mxu0 }
  0xe7   : > { %v317_v8 = vpop.f32.mrb[2].mxu0 }
  0xe8   : > { %322 = vst.msk [vmem:[#allocation2] sm:$0xff] %vm256_vm0, %v320_v6  ;;  %v471_v9 = vpop.f32.mrb[3].mxu0 }
  0xef   : > { %v326_v11 = vld [vmem:[#allocation2] sm:$0xff] }
  0xf0   : > { %v334_v12 = vadd.f32 %v458_v10, %v326_v11 }
  0xf2   : > { %v335_v13 = vpack.c.bf16 %v334_v12, %v334_v12 }
  0xf4   : > { %337 = vst.msk [vmem:[%s250_s28] sm:$0xf] %vm336_vm3, %v335_v13 }
  0xf5 PF: > { %s13_s14 = sadd.s32 1, %s522_s14   ;;  %s594_s12 = smov %s518_s13 }
  0xf6   : > { %p10_p5 = scmp.ge.s32.totalorder %s13_s14, 4   ;;  %s595_s13 = smov %s597_s15 }
  0xf8   :  { %12 = sbr.rel (!%p10_p5) target bundleno = 2 (0x2), region = 76 }

// kernel: forward.46
= control target key start
LH: loop header
LB: loop body
LE: loop exit
PB: predicated region body
PF: predicated region fallthrough
CT: control target
= control target key end

     0   :  { %s545_s12 = smov 0   ;;  %s547_s13 = smov 0   ;;  %s587_s0 = inlined_call_operand.vmem [shape: bf16[16,32], index: 0, kind: input, shape index: {}]   ;;  %s588_s1 = inlined_call_operand.vmem [shape: bf16[32,32], index: 1, kind: input, shape index: {}]   ;;  %s589_s2 = inlined_call_operand.vmem [shape: f32[1,32], index: 2, kind: input, shape index: {}]   ;;  %s590_s3 = inlined_call_operand.vmem [shape: bf16[16,32], index: 3, kind: output, shape index: {}]  }
   0x1   :  { %s549_s14 = smov 0  }
   0x2 LB: > { %s32_s15 = sadd.s32 1, %s517_s13  ;;  %p451_p0 = scmp.ge.s32.totalorder %s521_s14, 1  ;;  %s521_s14 = sphi %s549_s14, %s13_s14   ;;  %s517_s13 = sphi %s547_s13, %s592_s13   ;;  %s513_s12 = sphi %s545_s12, %s591_s12  }
   0x3   : > { %p34_p1 = scmp.ge.s32.totalorder %s32_s15, 2  ;;  %p186_p2 = scmp.lt.s32.totalorder %s521_s14, 3 }
   0x5   : > { %s594_s15 = smov (%p34_p1, %s32_s15), 0  ;;  %p187_p3 = pnand %p451_p0, %p186_p2 }
   0x6   : > { %v497_v0 = vld [vmem:[%s588_s1] sm:$0xff] (!%p187_p3)   ;;  %v523_v1 = vmov (!%p187_p3), 0.0   ;;  %v498_v2 = vld [vmem:[%s588_s1 + $0x8] sm:$0xff] (!%p187_p3)   ;;  %vm524_vm0 = vmmov (!%p187_p3), 0   ;;  %p225_p4 = scmp.lt.s32.totalorder (!%p187_p3), %s513_s12, 1  ;;  %vm256_vm1 = vcmask (!%p187_p3), 261120  }
   0x7   : > { %190 = sbr.rel (%p187_p3) target bundleno = 245 (0xf5), region = 32  ;;  %463 = vmatprep.subr.bf16.mxu0 (!%p187_p3), %v523_v1  ;;  %467 = vmatprep.mubr.msk.bf16.mxu0 (!%p187_p3), %vm524_vm0, %v523_v1  ;;  %257 = vst.msk [vmem:[#allocation2] sm:$0xff] (!%p187_p3), %vm256_vm1, %v523_v1  ;;  %v457_v10 = vld [vmem:[%s589_s2] ss:$0 sm:$0xff] (!%p187_p3)  ;;  %vm335_vm2 = vcmask (!%p187_p3), 257024  }
   0x8   : > { %464 = vmatpush3.bf16.msra.mxu0 (!%p187_p3), %v497_v0 }
   0x9   : > { %465 = vmatprep.subr.bf16.mxu0 (!%p187_p3), %v523_v1 }
   0xc   : > { %466 = vmatpush3.bf16.msra.mxu0 (!%p187_p3), %v498_v2 }
   0xe   : > { %s596_s12 = smov (!%p225_p4, %s513_s12), 1  ;;  %v258_v4 = vld [vmem:[#allocation2] sm:$0xff] }
   0xf   : > { %s452_s20 = sshll.u32 %s596_s12, 2 }
  0x10   : > { %s231_s23 = scalar_lea.vmem %s587_s0, %s452_s20  ;;  %s250_s28 = scalar_lea.vmem %s590_s3, %s452_s20 }
  0x11   : > { %v259_v3 = vld [vmem:[%s231_s23] sm:$0xf] }
  0x12   : > { %468 = vmatmul.mubr.msk.bf16.vlgmr.msra.gmra.mrb[0].mxu0 %vm256_vm1, %v259_v3 }
  0xe5   : > { %v314_v5 = vpop.f32.mrb[0].mxu0 }
  0xe6   : > { %v320_v6 = vadd.f32 %v314_v5, %v258_v4  ;;  %v469_v7 = vpop.f32.mrb[1].mxu0 }
  0xe7   : > { %v317_v8 = vpop.f32.mrb[2].mxu0 }
  0xe8   : > { %321 = vst.msk [vmem:[#allocation2] sm:$0xff] %vm256_vm1, %v320_v6  ;;  %v470_v9 = vpop.f32.mrb[3].mxu0 }
  0xef   : > { %v325_v11 = vld [vmem:[#allocation2] sm:$0xff] }
  0xf0   : > { %v333_v12 = vadd.f32 %v457_v10, %v325_v11 }
  0xf2   : > { %v334_v13 = vpack.c.bf16 %v333_v12, %v333_v12 }
  0xf4   : > { %336 = vst.msk [vmem:[%s250_s28] sm:$0xf] %vm335_vm2, %v334_v13 }
  0xf5 PF: > { %s13_s14 = sadd.s32 1, %s521_s14   ;;  %s591_s12 = smov %s517_s13 }
  0xf6   : > { %p10_p5 = scmp.ge.s32.totalorder %s13_s14, 4   ;;  %s592_s13 = smov %s594_s15 }
  0xf8   :  { %12 = sbr.rel (!%p10_p5) target bundleno = 2 (0x2), region = 76 }

// kernel: forward.36
= control target key start
LH: loop header
LB: loop body
LE: loop exit
PB: predicated region body
PF: predicated region fallthrough
CT: control target
= control target key end

     0   :  { %s666_s21 = smov 0   ;;  %s668_s22 = smov 0   ;;  %s732_s0 = inlined_call_operand.vmem [shape: bf16[16,64], index: 0, kind: input, shape index: {}]   ;;  %s733_s1 = inlined_call_operand.vmem [shape: bf16[64,32], index: 1, kind: input, shape index: {}]   ;;  %s734_s2 = inlined_call_operand.vmem [shape: f32[1,32], index: 2, kind: input, shape index: {}]   ;;  %s735_s3 = inlined_call_operand.vmem [shape: bf16[16,32], index: 3, kind: input, shape index: {}]   ;;  %s736_s4 = inlined_call_operand.vmem [shape: f32[1,32], index: 4, kind: input, shape index: {}]   ;;  %s737_s5 = inlined_call_operand.vmem [shape: f32[1,32], index: 5, kind: input, shape index: {}]   ;;  %s738_s6 = inlined_call_operand.vmem [shape: bf16[16,32], index: 6, kind: output, shape index: {}]  }
   0x1   :  { %s670_s23 = smov 0  }
   0x2 LB: > { %s28_s24 = sadd.s32 1, %s623_s22  ;;  %p542_p0 = scmp.ge.s32.totalorder %s627_s23, 1  ;;  %s627_s23 = sphi %s670_s23, %s16_s23   ;;  %s623_s22 = sphi %s668_s22, %s740_s22   ;;  %s619_s21 = sphi %s666_s21, %s739_s21  }
   0x3   : > { %p30_p1 = scmp.ge.s32.totalorder %s28_s24, 2  ;;  %p248_p2 = scmp.lt.s32.totalorder %s627_s23, 3 }
   0x5   : > { %s742_s24 = smov (%p30_p1, %s28_s24), 0  ;;  %p249_p3 = pnand %p542_p0, %p248_p2 }
   0x6   : > { %v599_v0 = vld [vmem:[%s733_s1] sm:$0xff] (!%p249_p3)   ;;  %v629_v1 = vmov (!%p249_p3), 0.0   ;;  %v600_v2 = vld [vmem:[%s733_s1 + $0x8] sm:$0xff] (!%p249_p3)   ;;  %vm630_vm0 = vmmov (!%p249_p3), 0   ;;  %p288_p4 = scmp.lt.s32.totalorder (!%p249_p3), %s619_s21, 1  ;;  %vm314_vm1 = vcmask (!%p249_p3), 261120  }
   0x7   : > { %252 = sbr.rel (%p249_p3) target bundleno = 565 (0x235), region = 44  ;;  %561 = vmatprep.subr.bf16.mxu0 (!%p249_p3), %v629_v1  ;;  %569 = vmatprep.mubr.msk.bf16.mxu0 (!%p249_p3), %vm630_vm0, %v629_v1  ;;  %315 = vst.msk [vmem:[#allocation2] sm:$0xff] (!%p249_p3), %vm314_vm1, %v629_v1  ;;  %v601_v3 = vld [vmem:[%s733_s1 + $0x10] sm:$0xff] (!%p249_p3)   ;;  %v602_v4 = vld [vmem:[%s733_s1 + $0x18] sm:$0xff] (!%p249_p3)   ;;  %vm350_vm2 = vcmask (!%p249_p3), 523264   ;;  %vm443_vm3 = vcmask (!%p249_p3), 257024  }
   0x8   : > { %562 = vmatpush3.bf16.msra.mxu0 (!%p249_p3), %v599_v0  ;;  %v551_v13 = vld [vmem:[%s734_s2] ss:$0 sm:$0xff] (!%p249_p3) }
   0x9   : > { %563 = vmatprep.subr.bf16.mxu0 (!%p249_p3), %v629_v1  ;;  %v552_v28 = vld [vmem:[%s736_s4] ss:$0 sm:$0xff] (!%p249_p3) }
   0xa   : > { %v553_v30 = vld [vmem:[%s737_s5] ss:$0 sm:$0xff] (!%p249_p3) }
   0xc   : > { %564 = vmatpush3.bf16.msra.mxu0 (!%p249_p3), %v600_v2 }
   0xd   : > { %565 = vmatprep.subr.bf16.mxu0 (!%p249_p3), %v629_v1 }
   0xe   : > { %s744_s21 = smov (!%p288_p4, %s619_s21), 1  ;;  %v316_v6 = vld [vmem:[#allocation2] sm:$0xff] }
   0xf   : > { %s694_s7 = sshll.u32 %s744_s21, 2 }
  0x10   : > { %566 = vmatpush3.bf16.msra.mxu0 %v601_v3  ;;  %s294_s12 = scalar_lea.vmem %s732_s0, %s694_s7  ;;  %s304_s15 = scalar_lea.vmem %s735_s3, %s694_s7 }
  0x11   : > { %567 = vmatprep.subr.bf16.mxu0 %v629_v1  ;;  %v317_v5 = vld [vmem:[%s294_s12] sm:$0xf]  ;;  %s308_s27 = scalar_lea.vmem %s738_s6, %s694_s7 }
  0x12   : > { %v409_v12 = vld [vmem:[%s304_s15] sm:$0xf] }
  0x13   : > { %v410_v14 = vunpack.c.l.bf16 %v409_v12 }
  0x14   : > { %568 = vmatpush3.bf16.msra.mxu0 %v602_v4 }
  0x17   : > { %570 = vmatmul.mubr.msk.bf16.vlgmr.msra.gmra.mrb[0].mxu0 %vm350_vm2, %v317_v5 }
  0xea   : > { %v388_v7 = vpop.f32.mrb[0].mxu0 }
  0xeb   : > { %v394_v8 = vadd.f32 %v388_v7, %v316_v6  ;;  %v571_v9 = vpop.f32.mrb[1].mxu0 }
  0xec   : > { %v391_v10 = vpop.f32.mrb[2].mxu0 }
  0xed   : > { %396 = vst.msk [vmem:[#allocation2] sm:$0xff] %vm314_vm1, %v394_v8  ;;  %v572_v11 = vpop.f32.mrb[3].mxu0 }
  0xf4   : > { %v400_v15 = vld [vmem:[#allocation2] sm:$0xff] }
  0xf5   : > { %v408_v16 = vadd.f32 %v551_v13, %v400_v15 }
  0xf7   : > { %v411_v17 = vadd.f32 %v410_v14, %v408_v16 }
  0xf9   : > { %v412_v18 = vsel %vm314_vm1, %v411_v17, 0.0 }
  0xfa   : > { %413 = vadd.xlane.f32.xlu0 %v412_v18 }
 0x187   : > { %v414_v19 = vpop.xlane.xlu0 %413 }
 0x188   : > { %v416_v20 = vmul.f32 0.03125, %v414_v19 }
 0x18a   : > { %v417_v21 = vsub.f32 %v411_v17, %v416_v20 }
 0x18c   : > { %v418_v22 = vmul.f32 %v417_v21, %v417_v21 }
 0x18e   : > { %v419_v23 = vsel %vm314_vm1, %v418_v22, 0.0 }
 0x18f   : > { %420 = vadd.xlane.f32.xlu0 %v419_v23 }
 0x21c   : > { %v421_v24 = vpop.xlane.xlu0 %420 }
 0x21d   : > { %v422_v25 = vmul.f32 0.03125, %v421_v24 }
 0x21f   : > { %v423_v26 = vadd.f32 1e-05, %v422_v25 }
 0x221   : > { %603 = vrsqrt.f32 %v423_v26 }
 0x22b   : > { %v604_v27 = vpop.eup %603 }
 0x22c   : > { %v425_v29 = vmul.f32 %v604_v27, %v417_v21 }
 0x22e   : > { %v433_v31 = vmul.f32 %v552_v28, %v425_v29 }
 0x230   : > { %v441_v32 = vadd.f32 %v553_v30, %v433_v31 }
 0x232   : > { %v442_v33 = vpack.c.bf16 %v441_v32, %v441_v32 }
 0x234   : > { %444 = vst.msk [vmem:[%s308_s27] sm:$0xf] %vm443_vm3, %v442_v33 }
 0x235 PF: > { %s16_s23 = sadd.s32 1, %s627_s23   ;;  %s739_s21 = smov %s623_s22 }
 0x236   : > { %p13_p5 = scmp.ge.s32.totalorder %s16_s23, 4   ;;  %s740_s22 = smov %s742_s24 }
 0x238   :  { %15 = sbr.rel (!%p13_p5) target bundleno = 2 (0x2), region = 88 }

// kernel: forward.48
= control target key start
LH: loop header
LB: loop body
LE: loop exit
PB: predicated region body
PF: predicated region fallthrough
CT: control target
= control target key end

     0   :  { %s845_s9 = smov 0   ;;  %s936_s0 = inlined_call_operand.vmem [shape: bf16[16,32], index: 0, kind: input, shape index: {}]   ;;  %s937_s1 = inlined_call_operand.vmem [shape: bf16[16,64], index: 1, kind: input, shape index: {}]   ;;  %s938_s2 = inlined_call_operand.vmem [shape: bf16[16,32], index: 2, kind: output, shape index: {}]  }
   0x1 LB: > { %s688_s10 = sadd.s32 4294967295, %s816_s9   ;;  %p692_p0 = scmp.ge.s32.totalorder %s816_s9, 1  ;;  %s816_s9 = sphi %s845_s9, %s12_s9  }
   0x2   : > { %p120_p1 = scmp.lt.s32.totalorder %s816_s9, 3 }
   0x4   : > { %p121_p2 = pnand %p692_p0, %p120_p1 }
   0x5   : > { %p144_p3 = scmp.lt.s32.totalorder (!%p121_p2), %s688_s10, 1  ;;  %v818_v0 = vmov (!%p121_p2), 0.0   ;;  %vm819_vm0 = vmmov (!%p121_p2), 0   ;;  %vm159_vm1 = vcmask (!%p121_p2), 64512   ;;  %s820_s18 = smov (!%p121_p2), 120   ;;  %vm224_vm2 = vcmask (!%p121_p2), 1043456  }
   0x6   : > { %124 = sbr.rel (%p121_p2) target bundleno = 1126 (0x466), region = 28  ;;  %724 = vmatprep.subr.bf16.mxu0 (!%p121_p2), %v818_v0  ;;  %726 = vmatprep.mubr.msk.bf16.mxu0 (!%p121_p2), %vm819_vm0, %v818_v0  ;;  %s821_s19 = smov (!%p121_p2), 112   ;;  %vm616_vm3 = vcmask (!%p121_p2), 130048   ;;  %vm618_vm4 = vcmask (!%p121_p2), 195584   ;;  %vm621_vm5 = vcmask (!%p121_p2), 257024  }
   0x7   : > { %730 = vmatprep.subr.bf16.mxu1 (!%p121_p2), %v818_v0  ;;  %732 = vmatprep.mubr.msk.bf16.mxu1 (!%p121_p2), %vm819_vm0, %v818_v0  ;;  %s822_s20 = smov (!%p121_p2), 104   ;;  %s823_s21 = smov (!%p121_p2), 96  }
   0x8   : > { %s824_s22 = smov (!%p121_p2), 88   ;;  %s825_s23 = smov (!%p121_p2), 72  }
   0x9   : > { %s826_s24 = smov (!%p121_p2), 80   ;;  %s827_s25 = smov (!%p121_p2), 8  }
   0xa   : > { %s828_s26 = smov (!%p121_p2), 16   ;;  %s829_s27 = smov (!%p121_p2), 24  }
   0xd   : > { %s940_s10 = smov (!%p144_p3, %s688_s10), 1 }
   0xe   : > { %s859_s11 = sshll.u32 %s940_s10, 2 }
   0xf   : > { %s151_s14 = scalar_lea.vmem %s937_s1, %s859_s11  ;;  %s147_s17 = scalar_lea.vmem %s936_s0, %s859_s11 }
  0x10   : > { %v158_v1 = vld [vmem:[%s151_s14] sm:$0xf]  ;;  %s155_s30 = scalar_lea.vmem %s938_s2, %s859_s11 }
  0x11   : > { %v164_v2 = vsel %vm159_vm1, %v158_v1, 0  ;;  %v157_v3 = vld [vmem:[%s147_s17] sm:$0xf]  ;;  %v874_v4 = vcombine.low %v158_v1, %v158_v1 }
  0x12   : > { %725 = vmatpush3.bf16.xpose.msra.mxu0 %v164_v2  ;;  %v699_v5 = vcombine.low %v157_v3, %v157_v3 }
  0x13   : > { %742 = vmatprep.subr.bf16.mxu0 %v818_v0  ;;  %275 = vrot.lane.b32.xlu1 %v874_v4, %s820_s18 }
  0x17   : > { %273 = vrot.lane.b32.xlu1 %v699_v5, %s820_s18 }
  0x19   : > { %727 = vmatmul.mubr.msk.bf16.vlgmr.msra.gmra.mrb[0].mxu0 %vm159_vm1, %v157_v3 }
  0x1a   : > { %744 = vmatprep.mubr.msk.bf16.mxu0 %vm819_vm0, %v818_v0 }
  0x1b   : > { %385 = vrot.lane.b32.xlu1 %v874_v4, %s821_s19 }
  0x1f   : > { %383 = vrot.lane.b32.xlu1 %v699_v5, %s821_s19 }
  0x23   : > { %495 = vrot.lane.b32.xlu1 %v874_v4, %s822_s20 }
  0x27   : > { %493 = vrot.lane.b32.xlu1 %v699_v5, %s822_s20 }
  0x85   : > { %v276_v16 = vpop.permute.xlu1 %275 }
  0x86   : > { %v281_v19 = vsel %vm159_vm1, %v276_v16, 0 }
  0x89   : > { %v274_v17 = vpop.permute.xlu1 %273 }
  0x8d   : > { %v386_v21 = vpop.permute.xlu1 %385 }
  0x8e   : > { %v391_v23 = vsel %vm159_vm1, %v386_v21, 0 }
  0x91   : > { %v384_v22 = vpop.permute.xlu1 %383 }
  0x95   : > { %v496_v24 = vpop.permute.xlu1 %495 }
  0x96   : > { %v501_v25 = vsel %vm159_vm1, %v496_v24, 0 }
  0x99   : > { %v494_v26 = vpop.permute.xlu1 %493 }
  0xec   : > { %v200_v6 = vpop.f32.mrb[0].mxu0 }
  0xed   : > { %v728_v7 = vpop.f32.mrb[1].mxu0  ;;  %v206_v8 = vsel %vm159_vm1, %v200_v6, -inf }
  0xee   : > { %207 = vmax.xlane.f32.xlu0 %v206_v8  ;;  %v203_v9 = vpop.f32.mrb[2].mxu0 }
  0xef   : > { %v729_v10 = vpop.f32.mrb[3].mxu0 }
 0x104   : > { %219 = vrot.lane.b32.xlu0 %v874_v4, %s823_s21 }
 0x17b   : > { %v208_v11 = vpop.xlane.xlu0 %207 }
 0x17c   : > { %v209_v12 = vsub.f32 %v200_v6, %v208_v11 }
 0x17e   : > { %v210_v13 = vmul.f32 1.442695, %v209_v12 }
 0x17f   : > { %v220_v14 = vpop.permute.xlu0 %219 }
 0x180   : > { %794 = vpow2.f32 %v210_v13  ;;  %v226_v15 = vsel %vm224_vm2, %v220_v14, 0 }
 0x181   : > { %731 = vmatpush3.bf16.msra.mxu1 %v226_v15 }
 0x182   : > { %736 = vmatprep.subr.bf16.mxu1 %v818_v0 }
 0x18a   : > { %v883_v18 = vpop.eup %794 }
 0x18b   : > { %v215_v20 = vpack.c.bf16 %v883_v18, %v883_v18  ;;  %v212_v61 = vsel %vm159_vm1, %v883_v18, 0.0 }
 0x18d   : > { %733 = vmatmul.mubr.msk.bf16.vlgmr.msra.gmra.mrb[0].mxu1 %vm159_vm1, %v215_v20 }
 0x18e   : > { %737 = vmatpush3.bf16.xpose.msra.mxu1 %v281_v19  ;;  %738 = vmatprep.mubr.msk.bf16.mxu1 %vm819_vm0, %v818_v0 }
 0x18f   : > { %748 = vmatprep.subr.bf16.mxu1 %v818_v0 }
 0x195   : > { %739 = vmatmul.mubr.msk.bf16.vlgmr.msra.gmra.mrb[4].mxu1 %vm159_vm1, %v274_v17 }
 0x196   : > { %749 = vmatpush3.bf16.xpose.msra.mxu1 %v391_v23  ;;  %750 = vmatprep.mubr.msk.bf16.mxu1 %vm819_vm0, %v818_v0 }
 0x197   : > { %760 = vmatprep.subr.bf16.mxu1 %v818_v0 }
 0x19d   : > { %751 = vmatmul.mubr.msk.bf16.vlgmr.msra.gmra.mrb[8].mxu1 %vm159_vm1, %v384_v22 }
 0x19e   : > { %761 = vmatpush3.bf16.xpose.msra.mxu1 %v501_v25  ;;  %762 = vmatprep.mubr.msk.bf16.mxu1 %vm819_vm0, %v818_v0 }
 0x1a5   : > { %763 = vmatmul.mubr.msk.bf16.vlgmr.msra.gmra.mrb[12].mxu1 %vm159_vm1, %v494_v26 }
 0x260   : > { %v902_v27 = vpop.f32.mrb[0].mxu1 }
 0x261   : > { %v734_v28 = vpop.f32.mrb[1].mxu1 }
 0x262   : > { %v265_v29 = vpop.f32.mrb[2].mxu1 }
 0x263   : > { %v735_v30 = vpop.f32.mrb[3].mxu1 }
 0x268   : > { %v317_v31 = vpop.f32.mrb[4].mxu1 }
 0x269   : > { %v740_v32 = vpop.f32.mrb[5].mxu1  ;;  %v323_v33 = vsel %vm159_vm1, %v317_v31, -inf }
 0x26a   : > { %324 = vmax.xlane.f32.xlu1 %v323_v33  ;;  %v320_v34 = vpop.f32.mrb[6].mxu1 }
 0x26b   : > { %v741_v35 = vpop.f32.mrb[7].mxu1 }
 0x270   : > { %v427_v36 = vpop.f32.mrb[8].mxu1 }
 0x271   : > { %v752_v37 = vpop.f32.mrb[9].mxu1  ;;  %v433_v38 = vsel %vm159_vm1, %v427_v36, -inf }
 0x272   : > { %434 = vmax.xlane.f32.xlu0 %v433_v38  ;;  %v430_v39 = vpop.f32.mrb[10].mxu1 }
 0x273   : > { %v753_v40 = vpop.f32.mrb[11].mxu1 }
 0x278   : > { %v537_v41 = vpop.f32.mrb[12].mxu1 }
 0x279   : > { %v764_v42 = vpop.f32.mrb[13].mxu1  ;;  %v543_v43 = vsel %vm159_vm1, %v537_v41, -inf }
 0x27a   : > { %544 = vmax.xlane.f32.xlu0 %v543_v43  ;;  %v540_v44 = vpop.f32.mrb[14].mxu1 }
 0x27b   : > { %v765_v45 = vpop.f32.mrb[15].mxu1  ;;  %333 = vrot.lane.b32.xlu1 %v874_v4, %s824_s22 }
 0x27f   : > { %553 = vrot.lane.b32.xlu1 %v874_v4, %s825_s23 }
 0x290   : > { %443 = vrot.lane.b32.xlu0 %v874_v4, %s826_s24 }
 0x2f7   : > { %v325_v46 = vpop.xlane.xlu1 %324 }
 0x2f8   : > { %v326_v47 = vsub.f32 %v317_v31, %v325_v46 }
 0x2fa   : > { %v327_v48 = vmul.f32 1.442695, %v326_v47 }
 0x2fb   : > { %v334_v49 = vpop.permute.xlu1 %333 }
 0x2fc   : > { %796 = vpow2.f32 %v327_v48  ;;  %v339_v50 = vsel %vm224_vm2, %v334_v49, 0 }
 0x2fd   : > { %743 = vmatpush3.bf16.msra.mxu0 %v339_v50 }
 0x2fe   : > { %754 = vmatprep.subr.bf16.mxu0 %v818_v0 }
 0x2ff   : > { %v435_v51 = vpop.xlane.xlu0 %434  ;;  %v554_v63 = vpop.permute.xlu1 %553 }
 0x300   : > { %v436_v52 = vsub.f32 %v427_v36, %v435_v51  ;;  %v559_v4 = vsel %vm224_vm2, %v554_v63, 0 }
 0x302   : > { %v437_v53 = vmul.f32 1.442695, %v436_v52 }
 0x304   : > { %798 = vpow2.f32 %v437_v53 }
 0x306   : > { %v797_v54 = vpop.eup %796 }
 0x307   : > { %v545_v55 = vpop.xlane.xlu0 %544  ;;  %v329_v56 = vsel %vm159_vm1, %v797_v54, 0.0  ;;  %v332_v57 = vpack.c.bf16 %v797_v54, %v797_v54 }
 0x308   : > { %v546_v58 = vsub.f32 %v537_v41, %v545_v55  ;;  %330 = vadd.xlane.f32.xlu1 %v329_v56 }
 0x309   : > { %745 = vmatmul.mubr.msk.bf16.vlgmr.msra.gmra.mrb[4].mxu0 %vm159_vm1, %v332_v57 }
 0x30a   : > { %v547_v59 = vmul.f32 1.442695, %v546_v58  ;;  %756 = vmatprep.mubr.msk.bf16.mxu0 %vm819_vm0, %v818_v0 }
 0x30b   : > { %v444_v60 = vpop.permute.xlu0 %443 }
 0x30c   : > { %800 = vpow2.f32 %v547_v59  ;;  %v449_v62 = vsel %vm224_vm2, %v444_v60, 0  ;;  %213 = vadd.xlane.f32.xlu1 %v212_v61 }
 0x30d   : > { %755 = vmatpush3.bf16.msra.mxu0 %v449_v62 }
 0x30e   : > { %v799_v1 = vpop.eup %798  ;;  %766 = vmatprep.subr.bf16.mxu0 %v818_v0 }
 0x30f   : > { %v439_v2 = vsel %vm159_vm1, %v799_v1, 0.0  ;;  %v442_v3 = vpack.c.bf16 %v799_v1, %v799_v1 }
 0x310   : > { %440 = vadd.xlane.f32.xlu0 %v439_v2 }
 0x311   : > { %757 = vmatmul.mubr.msk.bf16.vlgmr.msra.gmra.mrb[8].mxu0 %vm159_vm1, %v442_v3 }
 0x312   : > { %767 = vmatpush3.bf16.msra.mxu0 %v559_v4  ;;  %768 = vmatprep.mubr.msk.bf16.mxu0 %vm819_vm0, %v818_v0 }
 0x316   : > { %v801_v5 = vpop.eup %800 }
 0x317   : > { %v549_v6 = vsel %vm159_vm1, %v801_v5, 0.0  ;;  %v552_v7 = vpack.c.bf16 %v801_v5, %v801_v5 }
 0x318   : > { %550 = vadd.xlane.f32.xlu0 %v549_v6 }
 0x319   : > { %769 = vmatmul.mubr.msk.bf16.vlgmr.msra.gmra.mrb[12].mxu0 %vm159_vm1, %v552_v7 }
 0x395   : > { %v331_v8 = vpop.xlane.xlu1 %330 }
 0x396   : > { %802 = vrcp.f32 %v331_v8 }
 0x399   : > { %v214_v29 = vpop.xlane.xlu1 %213 }
 0x39d   : > { %v441_v9 = vpop.xlane.xlu0 %440 }
 0x39e   : > { %804 = vrcp.f32 %v441_v9 }
 0x3a0   : > { %v803_v10 = vpop.eup %802 }
 0x3a5   : > { %v551_v15 = vpop.xlane.xlu0 %550 }
 0x3a6   : > { %806 = vrcp.f32 %v551_v15 }
 0x3a7   : > { %808 = vrcp.f32 %v214_v29 }
 0x3a8   : > { %v805_v16 = vpop.eup %804 }
 0x3b0   : > { %v807_v22 = vpop.eup %806 }
 0x3b1   : > { %v809_v30 = vpop.eup %808 }
 0x3b2   : > { %v269_v33 = vmul.f32 %v809_v30, %v902_v27 }
 0x3dc   : > { %v375_v11 = vpop.f32.mrb[4].mxu0 }
 0x3dd   : > { %v382_v12 = vmul.f32 %v803_v10, %v375_v11  ;;  %v746_v13 = vpop.f32.mrb[5].mxu0 }
 0x3de   : > { %v378_v14 = vpop.f32.mrb[6].mxu0 }
 0x3df   : > { %604 = vrot.lane.b32.xlu0 %v382_v12, %s827_s25  ;;  %v747_v0 = vpop.f32.mrb[7].mxu0 }
 0x3e4   : > { %v485_v17 = vpop.f32.mrb[8].mxu0 }
 0x3e5   : > { %v492_v18 = vmul.f32 %v805_v16, %v485_v17  ;;  %v758_v19 = vpop.f32.mrb[9].mxu0 }
 0x3e6   : > { %v488_v20 = vpop.f32.mrb[10].mxu0 }
 0x3e7   : > { %608 = vrot.lane.b32.xlu1 %v492_v18, %s828_s26  ;;  %v759_v21 = vpop.f32.mrb[11].mxu0 }
 0x3ec   : > { %v595_v23 = vpop.f32.mrb[12].mxu0 }
 0x3ed   : > { %v602_v24 = vmul.f32 %v807_v22, %v595_v23  ;;  %v770_v25 = vpop.f32.mrb[13].mxu0 }
 0x3ee   : > { %v598_v26 = vpop.f32.mrb[14].mxu0 }
 0x3ef   : > { %612 = vrot.lane.b32.xlu1 %v602_v24, %s829_s27  ;;  %v771_v28 = vpop.f32.mrb[15].mxu0 }
 0x451   : > { %v605_v31 = vpop.permute.xlu0 %604 }
 0x452   : > { %v615_v34 = vsel %vm159_vm1, %v269_v33, %v605_v31 }
 0x459   : > { %v609_v32 = vpop.permute.xlu1 %608 }
 0x45a   : > { %v617_v35 = vsel %vm616_vm3, %v615_v34, %v609_v32 }
 0x461   : > { %v613_v36 = vpop.permute.xlu1 %612 }
 0x462   : > { %v619_v37 = vsel %vm618_vm4, %v617_v35, %v613_v36 }
 0x463   : > { %v620_v38 = vpack.c.bf16 %v619_v37, %v619_v37 }
 0x465   : > { %622 = vst.msk [vmem:[%s155_s30] sm:$0xf] %vm621_vm5, %v620_v38 }
 0x466 PF: > { %s12_s9 = sadd.s32 1, %s816_s9  }
 0x467   : > { %p9_p4 = scmp.ge.s32.totalorder %s12_s9, 4  }
 0x469   :  { %11 = sbr.rel (!%p9_p4) target bundleno = 1 (0x1), region = 61 }

// kernel: forward.61
= control target key start
LH: loop header
LB: loop body
LE: loop exit
PB: predicated region body
PF: predicated region fallthrough
CT: control target
= control target key end

     0   :  { %s542_s12 = smov 0   ;;  %s544_s13 = smov 0   ;;  %s584_s0 = inlined_call_operand.vmem [shape: bf16[16,32], index: 0, kind: input, shape index: {}]   ;;  %s585_s1 = inlined_call_operand.vmem [shape: bf16[32,128], index: 1, kind: input, shape index: {}]   ;;  %s586_s2 = inlined_call_operand.vmem [shape: f32[1,128], index: 2, kind: input, shape index: {}]   ;;  %s587_s3 = inlined_call_operand.vmem [shape: f32[16,128], index: 3, kind: output, shape index: {}]  }
   0x1   :  { %s546_s14 = smov 0  }
   0x2 LB: > { %s32_s15 = sadd.s32 1, %s514_s13  ;;  %p448_p0 = scmp.ge.s32.totalorder %s518_s14, 1  ;;  %s518_s14 = sphi %s546_s14, %s13_s14   ;;  %s514_s13 = sphi %s544_s13, %s589_s13   ;;  %s510_s12 = sphi %s542_s12, %s588_s12  }
   0x3   : > { %p34_p1 = scmp.ge.s32.totalorder %s32_s15, 2  ;;  %p186_p2 = scmp.lt.s32.totalorder %s518_s14, 3 }
   0x5   : > { %s591_s15 = smov (%p34_p1, %s32_s15), 0  ;;  %p187_p3 = pnand %p448_p0, %p186_p2 }
   0x6   : > { %v494_v0 = vld [vmem:[%s585_s1] sm:$0xff] (!%p187_p3)   ;;  %v520_v1 = vmov (!%p187_p3), 0.0   ;;  %v495_v2 = vld [vmem:[%s585_s1 + $0x8] sm:$0xff] (!%p187_p3)   ;;  %vm521_vm0 = vmmov (!%p187_p3), 0   ;;  %p225_p4 = scmp.lt.s32.totalorder (!%p187_p3), %s510_s12, 1  ;;  %vm275_vm1 = vcmask (!%p187_p3), 261120  }
   0x7   : > { %190 = sbr.rel (%p187_p3) target bundleno = 233 (0xe9), region = 32  ;;  %460 = vmatprep.subr.bf16.mxu0 (!%p187_p3), %v520_v1  ;;  %464 = vmatprep.mubr.msk.bf16.mxu0 (!%p187_p3), %vm521_vm0, %v520_v1  ;;  %v454_v4 = vld [vmem:[%s586_s2] ss:$0 sm:$0xff] (!%p187_p3) }
   0x8   : > { %461 = vmatpush3.bf16.msra.mxu0 (!%p187_p3), %v494_v0 }
   0x9   : > { %462 = vmatprep.subr.bf16.mxu0 (!%p187_p3), %v520_v1 }
   0xc   : > { %463 = vmatpush3.bf16.msra.mxu0 (!%p187_p3), %v495_v2 }
   0xe   : > { %s593_s12 = smov (!%p225_p4, %s510_s12), 1 }
   0xf   : > { %s449_s20 = sshll.u32 %s593_s12, 2  ;;  %s450_s24 = sshll.u32 %s593_s12, 3 }
  0x10   : > { %s231_s23 = scalar_lea.vmem %s584_s0, %s449_s20  ;;  %s250_s29 = scalar_lea.vmem %s587_s3, %s450_s24 }
  0x11   : > { %v258_v3 = vld [vmem:[%s231_s23] sm:$0xf] }
  0x12   : > { %465 = vmatmul.mubr.msk.bf16.vlgmr.msra.gmra.mrb[0].mxu0 %vm275_vm1, %v258_v3 }
  0xe5   : > { %v313_v5 = vpop.f32.mrb[0].mxu0 }
  0xe6   : > { %v332_v6 = vadd.f32 %v454_v4, %v313_v5  ;;  %v466_v7 = vpop.f32.mrb[1].mxu0 }
  0xe7   : > { %v316_v8 = vpop.f32.mrb[2].mxu0 }
  0xe8   : > { %333 = vst [vmem:[%s250_s29] sm:$0xff] %v332_v6  ;;  %v467_v9 = vpop.f32.mrb[3].mxu0 }
  0xe9 PF: > { %s13_s14 = sadd.s32 1, %s518_s14   ;;  %s588_s12 = smov %s514_s13 }
  0xea   : > { %p10_p5 = scmp.ge.s32.totalorder %s13_s14, 4   ;;  %s589_s13 = smov %s591_s15 }
  0xec   :  { %12 = sbr.rel (!%p10_p5) target bundleno = 2 (0x2), region = 76 }

</bundles_post_ra>
